<compile_context>
chip_gen: v7x
topology: tpu7x:2x2x1
jax: 0.10.0
libtpu: 0.0.40
codegen_flags: <defaults>
</compile_context>

<pallas_src>
import numpy as np
import jax
import jax.numpy as jnp
from jax import lax
from jax.experimental import pallas as pl
from jax.experimental.pallas import tpu as pltpu


# --------------------------------------------------------------------------
# Batched Gauss-Jordan inverse with partial pivoting (T tiny & static, fully
# unrolled; purely masks + reductions, no dynamic indexing).
# --------------------------------------------------------------------------
def _gj_inverse(lbar):
    f32 = jnp.float32
    Bb, T, _ = lbar.shape
    row_idx = lax.broadcasted_iota(jnp.int32, (1, T, 1), 1)          # (1,T,1)
    rfloat = row_idx.astype(f32)
    eye = (lax.broadcasted_iota(jnp.int32, (1, T, T), 1) ==
           lax.broadcasted_iota(jnp.int32, (1, T, T), 2)).astype(f32)
    M = jnp.concatenate([lbar, jnp.broadcast_to(eye, (Bb, T, T))], axis=2)

    for k in range(T):                                               # static unroll
        col_k = M[:, :, k:k + 1]                                     # (Bb,T,1)
        absval = jnp.where(row_idx >= k, jnp.abs(col_k), -1.0)
        max_abs = jnp.max(absval, axis=1, keepdims=True)             # (Bb,1,1)
        cand = absval == max_abs
        p = jnp.min(jnp.where(cand, rfloat, float(T)), axis=1, keepdims=True)
        is_k = row_idx == k                                          # (1,T,1)
        is_p = rfloat == p                                           # (Bb,T,1)

        row_k = jnp.sum(jnp.where(is_k, M, 0.0), axis=1, keepdims=True)   # (Bb,1,2T)
        row_p = jnp.sum(jnp.where(is_p, M, 0.0), axis=1, keepdims=True)   # (Bb,1,2T)
        pivot_val = jnp.sum(jnp.where(is_p, col_k, 0.0), axis=1, keepdims=True)
        colk_at_k = jnp.sum(jnp.where(is_k, col_k, 0.0), axis=1, keepdims=True)

        # swap rows k <-> p
        M = jnp.where(is_k, row_p, jnp.where(is_p, row_k, M))
        # normalize pivot row
        pivot_row = row_p / pivot_val
        M = jnp.where(is_k, pivot_row, M)
        # eliminate column k from all other rows
        col_sw = jnp.where(is_k, 0.0, jnp.where(is_p, colk_at_k, col_k))
        M = M - col_sw * pivot_row

    return M[:, :, T:]                                               # (Bb,T,T)


def _transpose_last2(x):
    """(Bb,T,T) -> last-two-dims transpose via unrolled per-sample 2-D transposes."""
    return jnp.stack([x[b].T for b in range(x.shape[0])], axis=0)


# --------------------------------------------------------------------------
# Fused kernel factory.
# --------------------------------------------------------------------------
def _make_kernel(b_blk, T, S, sem_dim, out_w):
    f32 = jnp.float32
    PREC = lax.Precision.HIGHEST          # scoped per-dot; no global config
    N = b_blk * T
    pad_w = out_w - 2 * sem_dim - (T + 1)

    def kernel(str_ref, sem_ref, wcat_ref, wfz_ref, vec_ref, out_ref):
        x = str_ref[...]                                   # (N, S)
        wcat = wcat_ref[...]                               # (S, 3S+1)
        vec = vec_ref[...]                                 # (1, 2S+3*sem)
        b_pc = vec[:, :2 * S]                              # (1, 2S)  [bp | bc]
        expar = vec[:, 2 * S:2 * S + sem_dim]              # (1, sem)
        bfz = vec[:, 2 * S + sem_dim:2 * S + 3 * sem_dim]  # (1, 2*sem)

        # tp / tc / fi linears fused into ONE MXU push over (batch*token, S).
        h0 = jnp.dot(x, wcat[:, :2 * S + 1],
                     preferred_element_type=f32, precision=PREC)     # (N, 2S+1)
        pc = jnp.tanh(h0[:, :2 * S] + b_pc)
        tp, tc = pc[:, :S], pc[:, S:]
        fi = jnp.exp(h0[:, 2 * S:2 * S + 1]).reshape(b_blk, T, 1)    # (Bb,T,1)

        # bilinear score r_i = tp_i @ Wbil @ tc_i (constant along j, so exp()
        # is applied to the (.,1) vector BEFORE any TxT broadcast).
        w_bil = wcat[:, 2 * S + 1:]
        r = jnp.sum(jnp.dot(tp, w_bil, preferred_element_type=f32,
                            precision=PREC) * tc, axis=1, keepdims=True)
        er = jnp.exp(r).reshape(b_blk, T, 1)                          # (Bb,T,1)

        row = lax.broadcasted_iota(jnp.int32, (1, T, T), 1)
        col = lax.broadcasted_iota(jnp.int32, (1, T, T), 2)
        eye = (row == col).astype(f32)
        off_diag = 1.0 - eye

        A = er * off_diag                                   # A[b,i,j] = exp(r_i)*(1-I)
        col_sum = jnp.sum(A, axis=1, keepdims=True)         # (Bb,1,T)
        L = eye * col_sum - A                               # Laplacian
        fi_row = jnp.sum(fi * eye, axis=1, keepdims=True)   # (Bb,1,T)
        lbar = jnp.where(row == 0, fi_row, L)               # overwrite row 0 only

        linv = _gj_inverse(lbar)                            # (Bb,T,T)

        d0 = fi * linv[:, :, 0:1]                           # (Bb,T,1)
        diag_col = jnp.sum(linv * eye, axis=2, keepdims=True)   # (Bb,T,1): Linv[i,i]
        er_row = jnp.sum(er * eye, axis=1, keepdims=True)       # (Bb,1,T)
        AT = er_row * off_diag                               # A[b,j,i]
        m_row = (row != 0).astype(f32)
        m_col = (col != 0).astype(f32)
        # dx^T built directly (no transpose of Linv needed):
        #   dx^T[i,j] = (i!=0)*A[j,i]*Linv[i,i] - (j!=0)*A[j,i]*Linv[i,j]
        dxT = m_row * (AT * diag_col) - m_col * (AT * linv)  # (Bb,T,T)
        dx = _transpose_last2(dxT)

        sem3 = sem_ref[...].reshape(b_blk, T, sem_dim)
        # pinp = df @ [exparam ; sem_v],   cinp = dx @ sem_v
        pinp = d0 * expar.reshape(1, 1, sem_dim) + jnp.einsum(
            "bij,bjk->bik", dxT, sem3,
            preferred_element_type=f32, precision=PREC)
        cinp = jnp.einsum("bij,bjk->bik", dx, sem3,
                          preferred_element_type=f32, precision=PREC)

        finp = jnp.concatenate([sem3, pinp, cinp], axis=2).reshape(N, 3 * sem_dim)
        z = jnp.dot(finp, wfz_ref[...],
                    preferred_element_type=f32, precision=PREC) + bfz
        outv = jnp.maximum(z, 0.0)                           # (N, 2*sem)

        dfv = jnp.concatenate([d0, dxT], axis=2).reshape(N, T + 1)
        parts = [outv, dfv]
        if pad_w:
            parts.append(jnp.zeros((N, pad_w), f32))
        # single lane-concatenated slab store -> one DMA / grid step
        out_ref[...] = jnp.concatenate(parts, axis=1)

    return kernel


# --------------------------------------------------------------------------
# Wrapper
# --------------------------------------------------------------------------
def struct_induction_forward(x, p, sem_dim, bidirectional, b_blk=None):
    B, T, D = x.shape
    if bidirectional:
        xv = x.reshape(B, T, 2, D // 2)
        h = sem_dim // 2
        sem_v = jnp.concatenate([xv[:, :, 0, :h], xv[:, :, 1, :h]], axis=2)
        str_v = jnp.concatenate([xv[:, :, 0, h:], xv[:, :, 1, h:]], axis=2)
    else:
        sem_v = x[:, :, :sem_dim]
        str_v = x[:, :, sem_dim:]
    S = str_v.shape[2]

    if b_blk is None:
        # Largest block that still leaves >= 2 grid steps (keeps both v7x
        # TensorCores busy via dimension_semantics=("parallel",)); cap at 8.
        b_blk = max(1, min(8, B // 2))
    grid_b = -(-B // b_blk)
    b_pad = grid_b * b_blk
    if b_pad != B:
        padn = b_pad - B
        str_v = jnp.concatenate([str_v, jnp.zeros((padn, T, S), str_v.dtype)], 0)
        sem_v = jnp.concatenate([sem_v, jnp.zeros((padn, T, sem_dim), sem_v.dtype)], 0)

    # Merge batch & token into the sublane axis (free, contiguous reshapes).
    str2 = str_v.reshape(b_pad * T, S)
    sem2 = sem_v.reshape(b_pad * T, sem_dim)

    # Consolidated parameter arrays (3 param DMAs instead of 11).
    wcat = jnp.concatenate([p["wp"].T, p["wc"].T, p["wfi"].T, p["wbil"]], axis=1)
    wfz = p["wfz"].T                                                  # (3sem, 2sem)
    vec = jnp.concatenate(
        [p["bp"], p["bc"], p["exparam"].reshape(-1), p["bfz"]])[None, :]

    df_w = -(-(T + 1) // 8) * 8                                       # 9 -> 16
    out_w = 2 * sem_dim + df_w
    N = b_blk * T

    slab = pl.pallas_call(
        _make_kernel(b_blk, T, S, sem_dim, out_w),
        out_shape=jax.ShapeDtypeStruct((b_pad * T, out_w), jnp.float32),
        grid=(grid_b,),
        in_specs=[
            pl.BlockSpec((N, S), lambda b: (b, 0)),
            pl.BlockSpec((N, sem_dim), lambda b: (b, 0)),
            pl.BlockSpec((S, 3 * S + 1), lambda b: (0, 0)),
            pl.BlockSpec((3 * sem_dim, 2 * sem_dim), lambda b: (0, 0)),
            pl.BlockSpec((1, 2 * S + 3 * sem_dim), lambda b: (0, 0)),
        ],
        out_specs=pl.BlockSpec((N, out_w), lambda b: (b, 0)),
        compiler_params=pltpu.CompilerParams(
            dimension_semantics=("parallel",)),
    )(str2, sem2, wcat, wfz, vec)

    slab = slab.reshape(b_pad, T, out_w)
    out = slab[:B, :, :2 * sem_dim]
    df = slab[:B, :, 2 * sem_dim:2 * sem_dim + T + 1]
    return out, df


# --------------------------------------------------------------------------
# Host-side float64 numpy reference (mirrors the torch code, incl. the
# double-unsqueeze(2) bilinear and the row-0 Laplacian overwrite).
# --------------------------------------------------------------------------
def reference_np(x, p, sem_dim, bidirectional):
    x = x.astype(np.float64)
    p = {k: np.asarray(v, np.float64) for k, v in p.items()}
    B, T, D = x.shape
    if bidirectional:
        xv = x.reshape(B, T, 2, D // 2)
        h = sem_dim // 2
        sem_v = np.concatenate([xv[:, :, 0, :h], xv[:, :, 1, :h]], axis=2)
        str_v = np.concatenate([xv[:, :, 0, h:], xv[:, :, 1, h:]], axis=2)
    else:
        sem_v = x[:, :, :sem_dim]
        str_v = x[:, :, sem_dim:]
    tp = np.tanh(str_v @ p["wp"].T + p["bp"])
    tc = np.tanh(str_v @ p["wc"].T + p["bc"])
    r = np.einsum("bik,kl,bil->bi", tp, p["wbil"], tc)
    f_ij = np.broadcast_to(r[:, :, None], (B, T, T))
    f_i = np.exp(str_v @ p["wfi"].T)[..., 0]
    mask = 1.0 - np.eye(T)
    A = np.exp(f_ij) * mask
    col_sum = A.sum(axis=1)
    L = -A + np.eye(T) * col_sum[:, None, :]
    Lbar = L.copy()
    Lbar[:, 0, :] = f_i
    Linv = np.linalg.inv(Lbar)
    d0 = f_i * Linv[:, :, 0]
    diag = np.diagonal(Linv, axis1=-2, axis2=-1)
    tmp1 = A * diag[:, None, :]
    tmp2 = A * np.swapaxes(Linv, 1, 2)
    m1 = np.concatenate([np.zeros((B, T, 1)), np.ones((B, T, T - 1))], 2)
    m2 = np.concatenate([np.zeros((B, 1, T)), np.ones((B, T - 1, T))], 1)
    dx = m1 * tmp1 - m2 * tmp2
    d = np.concatenate([d0[:, None, :], dx], axis=1)
    df = np.swapaxes(d, 1, 2)
    ssr = np.concatenate(
        [np.broadcast_to(p["exparam"].reshape(1, 1, sem_dim), (B, 1, sem_dim)), sem_v], 1)
    pinp = df @ ssr
    cinp = dx @ sem_v
    finp = np.concatenate([sem_v, pinp, cinp], 2)
    out = np.maximum(finp @ p["wfz"].T + p["bfz"], 0.0)
    return out.astype(np.float32), df.astype(np.float32)


def init_params(key, sem_dim, hidden):
    str_dim = hidden - sem_dim
    ks = jax.random.split(key, 6)

    def xavier(k, shape, fan_in, fan_out):
        bound = np.sqrt(6.0 / (fan_in + fan_out))
        return jax.random.uniform(k, shape, jnp.float32, -bound, bound)

    return dict(
        wp=xavier(ks[0], (str_dim, str_dim), str_dim, str_dim),
        bp=jnp.zeros((str_dim,), jnp.float32),
        wc=xavier(ks[1], (str_dim, str_dim), str_dim, str_dim),
        bc=jnp.zeros((str_dim,), jnp.float32),
        wfi=xavier(ks[2], (1, str_dim), str_dim, 1),
        wbil=xavier(ks[3], (str_dim, str_dim), str_dim, str_dim),
        exparam=xavier(ks[4], (1, 1, sem_dim), 1, sem_dim),
        wfz=xavier(ks[5], (2 * sem_dim, 3 * sem_dim), 3 * sem_dim, 2 * sem_dim),
        bfz=jnp.zeros((2 * sem_dim,), jnp.float32),
    )


if __name__ == "__main__":
    T, HIDDEN, SEM_DIM = 8, 32, 16
    BIDIRECTIONAL = True

    key = jax.random.PRNGKey(0)
    kx, kp = jax.random.split(key)
    params = init_params(kp, SEM_DIM, HIDDEN)
    params_np = {k: np.asarray(v) for k, v in params.items()}

    # B=2 exercises one-sample-per-step (2 parallel grid steps for v7x);
    # B=8 exercises batch blocking (B_blk=4, still 2 parallel grid steps).
    for B in (2, 8):
        x = jax.random.normal(jax.random.fold_in(kx, B), (B, T, HIDDEN), jnp.float32)
        out, df = struct_induction_forward(x, params, SEM_DIM, BIDIRECTIONAL)
        out = jax.block_until_ready(out)
        df = jax.block_until_ready(df)

        out_ref, df_ref = reference_np(np.asarray(x), params_np, SEM_DIM, BIDIRECTIONAL)
        np.testing.assert_allclose(np.asarray(out), out_ref, rtol=1e-3, atol=1e-3)
        np.testing.assert_allclose(np.asarray(df), df_ref, rtol=1e-3, atol=1e-3)

    print("KERNEL_OK")
</pallas_src>

<mosaic_0001>
module attributes {stable_mosaic.version = 11 : i64} {
  func.func @kernel(%arg0: i32, %arg1: memref<8x16xf32, #tpu.memory_space<vmem>>, %arg2: memref<8x16xf32, #tpu.memory_space<vmem>>, %arg3: memref<16x49xf32, #tpu.memory_space<vmem>>, %arg4: memref<48x32xf32, #tpu.memory_space<vmem>>, %arg5: memref<1x80xf32, #tpu.memory_space<vmem>>, %arg6: memref<8x48xf32, #tpu.memory_space<vmem>>) attributes {dimension_semantics = [#tpu.dimension_semantics<parallel>], iteration_bounds = array<i64: 2>, scalar_prefetch = 0 : i64, scratch_operands = 0 : i64, tpu.core_type = #tpu.core_type<tc>, window_params = [{transform_indices = @transform_0, window_bounds = array<i64: 8, 16>}, {transform_indices = @transform_1, window_bounds = array<i64: 8, 16>}, {pipeline_mode = #tpu.pipeline_mode<synchronous>, transform_indices = @transform_2, window_bounds = array<i64: 16, 49>}, {pipeline_mode = #tpu.pipeline_mode<synchronous>, transform_indices = @transform_3, window_bounds = array<i64: 48, 32>}, {pipeline_mode = #tpu.pipeline_mode<synchronous>, transform_indices = @transform_4, window_bounds = array<i64: 1, 80>}, {transform_indices = @transform_5, window_bounds = array<i64: 8, 48>}]} {
    %c0 = arith.constant 0 : index
    %c0_0 = arith.constant 0 : index
    %0 = vector.load %arg1[%c0, %c0_0] : memref<8x16xf32, #tpu.memory_space<vmem>>, vector<8x16xf32>
    %c0_1 = arith.constant 0 : index
    %c0_2 = arith.constant 0 : index
    %1 = vector.load %arg3[%c0_1, %c0_2] : memref<16x49xf32, #tpu.memory_space<vmem>>, vector<16x49xf32>
    %c0_3 = arith.constant 0 : index
    %c0_4 = arith.constant 0 : index
    %2 = vector.load %arg5[%c0_3, %c0_4] : memref<1x80xf32, #tpu.memory_space<vmem>>, vector<1x80xf32>
    %3 = vector.extract_strided_slice %2 {offsets = [0, 0], sizes = [1, 32], strides = [1, 1]} : vector<1x80xf32> to vector<1x32xf32>
    %4 = vector.extract_strided_slice %2 {offsets = [0, 32], sizes = [1, 16], strides = [1, 1]} : vector<1x80xf32> to vector<1x16xf32>
    %5 = vector.extract_strided_slice %2 {offsets = [0, 48], sizes = [1, 32], strides = [1, 1]} : vector<1x80xf32> to vector<1x32xf32>
    %6 = vector.extract_strided_slice %1 {offsets = [0, 0], sizes = [16, 33], strides = [1, 1]} : vector<16x49xf32> to vector<16x33xf32>
    %cst = arith.constant dense<0.000000e+00> : vector<8x33xf32>
    %7 = tpu.matmul %0, %6, %cst {dimension_numbers = #tpu.dot_dimension_numbers<[1], [0], [0], [1], [0, 0, 1, 1], [], []>, precision = #tpu.contract_precision<fp32>} : vector<8x16xf32>, vector<16x33xf32>, vector<8x33xf32> -> vector<8x33xf32>
    %8 = vector.extract_strided_slice %7 {offsets = [0, 0], sizes = [8, 32], strides = [1, 1]} : vector<8x33xf32> to vector<8x32xf32>
    %9 = vector.broadcast %3 : vector<1x32xf32> to vector<8x32xf32>
    %10 = arith.addf %8, %9 : vector<8x32xf32>
    %11 = math.tanh %10 : vector<8x32xf32>
    %12 = vector.extract_strided_slice %11 {offsets = [0, 0], sizes = [8, 16], strides = [1, 1]} : vector<8x32xf32> to vector<8x16xf32>
    %13 = vector.extract_strided_slice %11 {offsets = [0, 16], sizes = [8, 16], strides = [1, 1]} : vector<8x32xf32> to vector<8x16xf32>
    %14 = vector.extract_strided_slice %7 {offsets = [0, 32], sizes = [8, 1], strides = [1, 1]} : vector<8x33xf32> to vector<8x1xf32>
    %15 = math.exp %14 : vector<8x1xf32>
    %16 = vector.shape_cast %15 : vector<8x1xf32> to vector<1x8x1xf32>
    %17 = vector.extract_strided_slice %1 {offsets = [0, 33], sizes = [16, 16], strides = [1, 1]} : vector<16x49xf32> to vector<16x16xf32>
    %cst_5 = arith.constant dense<0.000000e+00> : vector<8x16xf32>
    %18 = tpu.matmul %12, %17, %cst_5 {dimension_numbers = #tpu.dot_dimension_numbers<[1], [0], [0], [1], [0, 0, 1, 1], [], []>, precision = #tpu.contract_precision<fp32>} : vector<8x16xf32>, vector<16x16xf32>, vector<8x16xf32> -> vector<8x16xf32>
    %19 = arith.mulf %18, %13 : vector<8x16xf32>
    %cst_6 = arith.constant dense<0.000000e+00> : vector<8xf32>
    %20 = vector.multi_reduction <add>, %19, %cst_6 [1] : vector<8x16xf32> to vector<8xf32>
    %21 = vector.shape_cast %20 : vector<8xf32> to vector<8x1xf32>
    %22 = math.exp %21 : vector<8x1xf32>
    %23 = vector.shape_cast %22 : vector<8x1xf32> to vector<1x8x1xf32>
    %24 = tpu.iota {dimensions = array<i32: 1>} : vector<1x8x8xi32>
    %25 = tpu.iota {dimensions = array<i32: 2>} : vector<1x8x8xi32>
    %26 = arith.cmpi eq, %24, %25 : vector<1x8x8xi32>
    %27 = arith.extui %26 : vector<1x8x8xi1> to vector<1x8x8xi32>
    %28 = arith.sitofp %27 : vector<1x8x8xi32> to vector<1x8x8xf32>
    %cst_7 = arith.constant 1.000000e+00 : f32
    %29 = vector.broadcast %cst_7 : f32 to vector<1x8x8xf32>
    %30 = arith.subf %29, %28 : vector<1x8x8xf32>
    %31 = vector.broadcast %23 : vector<1x8x1xf32> to vector<1x8x8xf32>
    %32 = arith.mulf %31, %30 : vector<1x8x8xf32>
    %cst_8 = arith.constant dense<0.000000e+00> : vector<1x8xf32>
    %33 = vector.multi_reduction <add>, %32, %cst_8 [1] : vector<1x8x8xf32> to vector<1x8xf32>
    %34 = vector.shape_cast %33 : vector<1x8xf32> to vector<1x1x8xf32>
    %35 = vector.broadcast %34 : vector<1x1x8xf32> to vector<1x8x8xf32>
    %36 = arith.mulf %28, %35 : vector<1x8x8xf32>
    %37 = arith.subf %36, %32 : vector<1x8x8xf32>
    %38 = vector.broadcast %16 : vector<1x8x1xf32> to vector<1x8x8xf32>
    %39 = arith.mulf %38, %28 : vector<1x8x8xf32>
    %cst_9 = arith.constant dense<0.000000e+00> : vector<1x8xf32>
    %40 = vector.multi_reduction <add>, %39, %cst_9 [1] : vector<1x8x8xf32> to vector<1x8xf32>
    %41 = vector.shape_cast %40 : vector<1x8xf32> to vector<1x1x8xf32>
    %c0_i32 = arith.constant 0 : i32
    %42 = vector.broadcast %c0_i32 : i32 to vector<1x8x8xi32>
    %43 = arith.cmpi eq, %24, %42 : vector<1x8x8xi32>
    %44 = vector.shape_cast %41 : vector<1x1x8xf32> to vector<1x1x8xf32>
    %45 = vector.broadcast %44 : vector<1x1x8xf32> to vector<1x8x8xf32>
    %46 = arith.select %43, %45, %37 : vector<1x8x8xi1>, vector<1x8x8xf32>
    %47 = tpu.iota {dimensions = array<i32: 1>} : vector<1x8x1xi32>
    %48 = arith.sitofp %47 : vector<1x8x1xi32> to vector<1x8x1xf32>
    %49 = tpu.iota {dimensions = array<i32: 1>} : vector<1x8x8xi32>
    %50 = tpu.iota {dimensions = array<i32: 2>} : vector<1x8x8xi32>
    %51 = arith.cmpi eq, %49, %50 : vector<1x8x8xi32>
    %52 = arith.extui %51 : vector<1x8x8xi1> to vector<1x8x8xi32>
    %53 = arith.sitofp %52 : vector<1x8x8xi32> to vector<1x8x8xf32>
    %54 = tpu.concatenate %46, %53 in 2 : vector<1x8x8xf32>, vector<1x8x8xf32> -> vector<1x8x16xf32>
    %55 = vector.extract_strided_slice %54 {offsets = [0, 0, 0], sizes = [1, 8, 1], strides = [1, 1, 1]} : vector<1x8x16xf32> to vector<1x8x1xf32>
    %c0_i32_10 = arith.constant 0 : i32
    %56 = vector.broadcast %c0_i32_10 : i32 to vector<1x8x1xi32>
    %57 = arith.cmpi sge, %47, %56 : vector<1x8x1xi32>
    %58 = math.absf %55 : vector<1x8x1xf32>
    %cst_11 = arith.constant -1.000000e+00 : f32
    %59 = vector.broadcast %cst_11 : f32 to vector<1x8x1xf32>
    %60 = arith.select %57, %58, %59 : vector<1x8x1xi1>, vector<1x8x1xf32>
    %cst_12 = arith.constant dense<0xFF800000> : vector<1x1xf32>
    %61 = vector.multi_reduction <maximumf>, %60, %cst_12 [1] : vector<1x8x1xf32> to vector<1x1xf32>
    %62 = vector.shape_cast %61 : vector<1x1xf32> to vector<1x1x1xf32>
    %63 = vector.broadcast %62 : vector<1x1x1xf32> to vector<1x8x1xf32>
    %64 = arith.cmpf oeq, %60, %63 : vector<1x8x1xf32>
    %cst_13 = arith.constant 8.000000e+00 : f32
    %65 = vector.broadcast %cst_13 : f32 to vector<1x8x1xf32>
    %66 = arith.select %64, %48, %65 : vector<1x8x1xi1>, vector<1x8x1xf32>
    %cst_14 = arith.constant dense<0x7F800000> : vector<1x1xf32>
    %67 = vector.multi_reduction <minimumf>, %66, %cst_14 [1] : vector<1x8x1xf32> to vector<1x1xf32>
    %68 = vector.shape_cast %67 : vector<1x1xf32> to vector<1x1x1xf32>
    %c0_i32_15 = arith.constant 0 : i32
    %69 = vector.broadcast %c0_i32_15 : i32 to vector<1x8x1xi32>
    %70 = arith.cmpi eq, %47, %69 : vector<1x8x1xi32>
    %71 = vector.broadcast %68 : vector<1x1x1xf32> to vector<1x8x1xf32>
    %72 = arith.cmpf oeq, %48, %71 : vector<1x8x1xf32>
    %cst_16 = arith.constant 0.000000e+00 : f32
    %73 = vector.shape_cast %70 : vector<1x8x1xi1> to vector<1x8x1xi1>
    %74 = vector.broadcast %73 : vector<1x8x1xi1> to vector<1x8x16xi1>
    %75 = vector.broadcast %cst_16 : f32 to vector<1x8x16xf32>
    %76 = arith.select %74, %54, %75 : vector<1x8x16xi1>, vector<1x8x16xf32>
    %cst_17 = arith.constant dense<0.000000e+00> : vector<1x16xf32>
    %77 = vector.multi_reduction <add>, %76, %cst_17 [1] : vector<1x8x16xf32> to vector<1x16xf32>
    %78 = vector.shape_cast %77 : vector<1x16xf32> to vector<1x1x16xf32>
    %cst_18 = arith.constant 0.000000e+00 : f32
    %79 = vector.shape_cast %72 : vector<1x8x1xi1> to vector<1x8x1xi1>
    %80 = vector.broadcast %79 : vector<1x8x1xi1> to vector<1x8x16xi1>
    %81 = vector.broadcast %cst_18 : f32 to vector<1x8x16xf32>
    %82 = arith.select %80, %54, %81 : vector<1x8x16xi1>, vector<1x8x16xf32>
    %cst_19 = arith.constant dense<0.000000e+00> : vector<1x16xf32>
    %83 = vector.multi_reduction <add>, %82, %cst_19 [1] : vector<1x8x16xf32> to vector<1x16xf32>
    %84 = vector.shape_cast %83 : vector<1x16xf32> to vector<1x1x16xf32>
    %cst_20 = arith.constant 0.000000e+00 : f32
    %85 = vector.broadcast %cst_20 : f32 to vector<1x8x1xf32>
    %86 = arith.select %72, %55, %85 : vector<1x8x1xi1>, vector<1x8x1xf32>
    %cst_21 = arith.constant dense<0.000000e+00> : vector<1x1xf32>
    %87 = vector.multi_reduction <add>, %86, %cst_21 [1] : vector<1x8x1xf32> to vector<1x1xf32>
    %88 = vector.shape_cast %87 : vector<1x1xf32> to vector<1x1x1xf32>
    %cst_22 = arith.constant 0.000000e+00 : f32
    %89 = vector.broadcast %cst_22 : f32 to vector<1x8x1xf32>
    %90 = arith.select %70, %55, %89 : vector<1x8x1xi1>, vector<1x8x1xf32>
    %cst_23 = arith.constant dense<0.000000e+00> : vector<1x1xf32>
    %91 = vector.multi_reduction <add>, %90, %cst_23 [1] : vector<1x8x1xf32> to vector<1x1xf32>
    %92 = vector.shape_cast %91 : vector<1x1xf32> to vector<1x1x1xf32>
    %93 = vector.shape_cast %72 : vector<1x8x1xi1> to vector<1x8x1xi1>
    %94 = vector.broadcast %93 : vector<1x8x1xi1> to vector<1x8x16xi1>
    %95 = vector.shape_cast %78 : vector<1x1x16xf32> to vector<1x1x16xf32>
    %96 = vector.broadcast %95 : vector<1x1x16xf32> to vector<1x8x16xf32>
    %97 = arith.select %94, %96, %54 : vector<1x8x16xi1>, vector<1x8x16xf32>
    %98 = vector.shape_cast %70 : vector<1x8x1xi1> to vector<1x8x1xi1>
    %99 = vector.broadcast %98 : vector<1x8x1xi1> to vector<1x8x16xi1>
    %100 = vector.shape_cast %84 : vector<1x1x16xf32> to vector<1x1x16xf32>
    %101 = vector.broadcast %100 : vector<1x1x16xf32> to vector<1x8x16xf32>
    %102 = arith.select %99, %101, %97 : vector<1x8x16xi1>, vector<1x8x16xf32>
    %103 = vector.broadcast %88 : vector<1x1x1xf32> to vector<1x1x16xf32>
    %104 = arith.divf %84, %103 : vector<1x1x16xf32>
    %105 = vector.shape_cast %70 : vector<1x8x1xi1> to vector<1x8x1xi1>
    %106 = vector.broadcast %105 : vector<1x8x1xi1> to vector<1x8x16xi1>
    %107 = vector.shape_cast %104 : vector<1x1x16xf32> to vector<1x1x16xf32>
    %108 = vector.broadcast %107 : vector<1x1x16xf32> to vector<1x8x16xf32>
    %109 = arith.select %106, %108, %102 : vector<1x8x16xi1>, vector<1x8x16xf32>
    %110 = vector.shape_cast %92 : vector<1x1x1xf32> to vector<1x1x1xf32>
    %111 = vector.broadcast %110 : vector<1x1x1xf32> to vector<1x8x1xf32>
    %112 = arith.select %72, %111, %55 : vector<1x8x1xi1>, vector<1x8x1xf32>
    %cst_24 = arith.constant 0.000000e+00 : f32
    %113 = vector.broadcast %cst_24 : f32 to vector<1x8x1xf32>
    %114 = arith.select %70, %113, %112 : vector<1x8x1xi1>, vector<1x8x1xf32>
    %115 = vector.broadcast %114 : vector<1x8x1xf32> to vector<1x8x16xf32>
    %116 = vector.broadcast %104 : vector<1x1x16xf32> to vector<1x8x16xf32>
    %117 = arith.mulf %115, %116 : vector<1x8x16xf32>
    %118 = arith.subf %109, %117 : vector<1x8x16xf32>
    %119 = vector.extract_strided_slice %118 {offsets = [0, 0, 1], sizes = [1, 8, 1], strides = [1, 1, 1]} : vector<1x8x16xf32> to vector<1x8x1xf32>
    %c1_i32 = arith.constant 1 : i32
    %120 = vector.broadcast %c1_i32 : i32 to vector<1x8x1xi32>
    %121 = arith.cmpi sge, %47, %120 : vector<1x8x1xi32>
    %122 = math.absf %119 : vector<1x8x1xf32>
    %cst_25 = arith.constant -1.000000e+00 : f32
    %123 = vector.broadcast %cst_25 : f32 to vector<1x8x1xf32>
    %124 = arith.select %121, %122, %123 : vector<1x8x1xi1>, vector<1x8x1xf32>
    %cst_26 = arith.constant dense<0xFF800000> : vector<1x1xf32>
    %125 = vector.multi_reduction <maximumf>, %124, %cst_26 [1] : vector<1x8x1xf32> to vector<1x1xf32>
    %126 = vector.shape_cast %125 : vector<1x1xf32> to vector<1x1x1xf32>
    %127 = vector.broadcast %126 : vector<1x1x1xf32> to vector<1x8x1xf32>
    %128 = arith.cmpf oeq, %124, %127 : vector<1x8x1xf32>
    %cst_27 = arith.constant 8.000000e+00 : f32
    %129 = vector.broadcast %cst_27 : f32 to vector<1x8x1xf32>
    %130 = arith.select %128, %48, %129 : vector<1x8x1xi1>, vector<1x8x1xf32>
    %cst_28 = arith.constant dense<0x7F800000> : vector<1x1xf32>
    %131 = vector.multi_reduction <minimumf>, %130, %cst_28 [1] : vector<1x8x1xf32> to vector<1x1xf32>
    %132 = vector.shape_cast %131 : vector<1x1xf32> to vector<1x1x1xf32>
    %c1_i32_29 = arith.constant 1 : i32
    %133 = vector.broadcast %c1_i32_29 : i32 to vector<1x8x1xi32>
    %134 = arith.cmpi eq, %47, %133 : vector<1x8x1xi32>
    %135 = vector.broadcast %132 : vector<1x1x1xf32> to vector<1x8x1xf32>
    %136 = arith.cmpf oeq, %48, %135 : vector<1x8x1xf32>
    %cst_30 = arith.constant 0.000000e+00 : f32
    %137 = vector.shape_cast %134 : vector<1x8x1xi1> to vector<1x8x1xi1>
    %138 = vector.broadcast %137 : vector<1x8x1xi1> to vector<1x8x16xi1>
    %139 = vector.broadcast %cst_30 : f32 to vector<1x8x16xf32>
    %140 = arith.select %138, %118, %139 : vector<1x8x16xi1>, vector<1x8x16xf32>
    %cst_31 = arith.constant dense<0.000000e+00> : vector<1x16xf32>
    %141 = vector.multi_reduction <add>, %140, %cst_31 [1] : vector<1x8x16xf32> to vector<1x16xf32>
    %142 = vector.shape_cast %141 : vector<1x16xf32> to vector<1x1x16xf32>
    %cst_32 = arith.constant 0.000000e+00 : f32
    %143 = vector.shape_cast %136 : vector<1x8x1xi1> to vector<1x8x1xi1>
    %144 = vector.broadcast %143 : vector<1x8x1xi1> to vector<1x8x16xi1>
    %145 = vector.broadcast %cst_32 : f32 to vector<1x8x16xf32>
    %146 = arith.select %144, %118, %145 : vector<1x8x16xi1>, vector<1x8x16xf32>
    %cst_33 = arith.constant dense<0.000000e+00> : vector<1x16xf32>
    %147 = vector.multi_reduction <add>, %146, %cst_33 [1] : vector<1x8x16xf32> to vector<1x16xf32>
    %148 = vector.shape_cast %147 : vector<1x16xf32> to vector<1x1x16xf32>
    %cst_34 = arith.constant 0.000000e+00 : f32
    %149 = vector.broadcast %cst_34 : f32 to vector<1x8x1xf32>
    %150 = arith.select %136, %119, %149 : vector<1x8x1xi1>, vector<1x8x1xf32>
    %cst_35 = arith.constant dense<0.000000e+00> : vector<1x1xf32>
    %151 = vector.multi_reduction <add>, %150, %cst_35 [1] : vector<1x8x1xf32> to vector<1x1xf32>
    %152 = vector.shape_cast %151 : vector<1x1xf32> to vector<1x1x1xf32>
    %cst_36 = arith.constant 0.000000e+00 : f32
    %153 = vector.broadcast %cst_36 : f32 to vector<1x8x1xf32>
    %154 = arith.select %134, %119, %153 : vector<1x8x1xi1>, vector<1x8x1xf32>
    %cst_37 = arith.constant dense<0.000000e+00> : vector<1x1xf32>
    %155 = vector.multi_reduction <add>, %154, %cst_37 [1] : vector<1x8x1xf32> to vector<1x1xf32>
    %156 = vector.shape_cast %155 : vector<1x1xf32> to vector<1x1x1xf32>
    %157 = vector.shape_cast %136 : vector<1x8x1xi1> to vector<1x8x1xi1>
    %158 = vector.broadcast %157 : vector<1x8x1xi1> to vector<1x8x16xi1>
    %159 = vector.shape_cast %142 : vector<1x1x16xf32> to vector<1x1x16xf32>
    %160 = vector.broadcast %159 : vector<1x1x16xf32> to vector<1x8x16xf32>
    %161 = arith.select %158, %160, %118 : vector<1x8x16xi1>, vector<1x8x16xf32>
    %162 = vector.shape_cast %134 : vector<1x8x1xi1> to vector<1x8x1xi1>
    %163 = vector.broadcast %162 : vector<1x8x1xi1> to vector<1x8x16xi1>
    %164 = vector.shape_cast %148 : vector<1x1x16xf32> to vector<1x1x16xf32>
    %165 = vector.broadcast %164 : vector<1x1x16xf32> to vector<1x8x16xf32>
    %166 = arith.select %163, %165, %161 : vector<1x8x16xi1>, vector<1x8x16xf32>
    %167 = vector.broadcast %152 : vector<1x1x1xf32> to vector<1x1x16xf32>
    %168 = arith.divf %148, %167 : vector<1x1x16xf32>
    %169 = vector.shape_cast %134 : vector<1x8x1xi1> to vector<1x8x1xi1>
    %170 = vector.broadcast %169 : vector<1x8x1xi1> to vector<1x8x16xi1>
    %171 = vector.shape_cast %168 : vector<1x1x16xf32> to vector<1x1x16xf32>
    %172 = vector.broadcast %171 : vector<1x1x16xf32> to vector<1x8x16xf32>
    %173 = arith.select %170, %172, %166 : vector<1x8x16xi1>, vector<1x8x16xf32>
    %174 = vector.shape_cast %156 : vector<1x1x1xf32> to vector<1x1x1xf32>
    %175 = vector.broadcast %174 : vector<1x1x1xf32> to vector<1x8x1xf32>
    %176 = arith.select %136, %175, %119 : vector<1x8x1xi1>, vector<1x8x1xf32>
    %cst_38 = arith.constant 0.000000e+00 : f32
    %177 = vector.broadcast %cst_38 : f32 to vector<1x8x1xf32>
    %178 = arith.select %134, %177, %176 : vector<1x8x1xi1>, vector<1x8x1xf32>
    %179 = vector.broadcast %178 : vector<1x8x1xf32> to vector<1x8x16xf32>
    %180 = vector.broadcast %168 : vector<1x1x16xf32> to vector<1x8x16xf32>
    %181 = arith.mulf %179, %180 : vector<1x8x16xf32>
    %182 = arith.subf %173, %181 : vector<1x8x16xf32>
    %183 = vector.extract_strided_slice %182 {offsets = [0, 0, 2], sizes = [1, 8, 1], strides = [1, 1, 1]} : vector<1x8x16xf32> to vector<1x8x1xf32>
    %c2_i32 = arith.constant 2 : i32
    %184 = vector.broadcast %c2_i32 : i32 to vector<1x8x1xi32>
    %185 = arith.cmpi sge, %47, %184 : vector<1x8x1xi32>
    %186 = math.absf %183 : vector<1x8x1xf32>
    %cst_39 = arith.constant -1.000000e+00 : f32
    %187 = vector.broadcast %cst_39 : f32 to vector<1x8x1xf32>
    %188 = arith.select %185, %186, %187 : vector<1x8x1xi1>, vector<1x8x1xf32>
    %cst_40 = arith.constant dense<0xFF800000> : vector<1x1xf32>
    %189 = vector.multi_reduction <maximumf>, %188, %cst_40 [1] : vector<1x8x1xf32> to vector<1x1xf32>
    %190 = vector.shape_cast %189 : vector<1x1xf32> to vector<1x1x1xf32>
    %191 = vector.broadcast %190 : vector<1x1x1xf32> to vector<1x8x1xf32>
    %192 = arith.cmpf oeq, %188, %191 : vector<1x8x1xf32>
    %cst_41 = arith.constant 8.000000e+00 : f32
    %193 = vector.broadcast %cst_41 : f32 to vector<1x8x1xf32>
    %194 = arith.select %192, %48, %193 : vector<1x8x1xi1>, vector<1x8x1xf32>
    %cst_42 = arith.constant dense<0x7F800000> : vector<1x1xf32>
    %195 = vector.multi_reduction <minimumf>, %194, %cst_42 [1] : vector<1x8x1xf32> to vector<1x1xf32>
    %196 = vector.shape_cast %195 : vector<1x1xf32> to vector<1x1x1xf32>
    %c2_i32_43 = arith.constant 2 : i32
    %197 = vector.broadcast %c2_i32_43 : i32 to vector<1x8x1xi32>
    %198 = arith.cmpi eq, %47, %197 : vector<1x8x1xi32>
    %199 = vector.broadcast %196 : vector<1x1x1xf32> to vector<1x8x1xf32>
    %200 = arith.cmpf oeq, %48, %199 : vector<1x8x1xf32>
    %cst_44 = arith.constant 0.000000e+00 : f32
    %201 = vector.shape_cast %198 : vector<1x8x1xi1> to vector<1x8x1xi1>
    %202 = vector.broadcast %201 : vector<1x8x1xi1> to vector<1x8x16xi1>
    %203 = vector.broadcast %cst_44 : f32 to vector<1x8x16xf32>
    %204 = arith.select %202, %182, %203 : vector<1x8x16xi1>, vector<1x8x16xf32>
    %cst_45 = arith.constant dense<0.000000e+00> : vector<1x16xf32>
    %205 = vector.multi_reduction <add>, %204, %cst_45 [1] : vector<1x8x16xf32> to vector<1x16xf32>
    %206 = vector.shape_cast %205 : vector<1x16xf32> to vector<1x1x16xf32>
    %cst_46 = arith.constant 0.000000e+00 : f32
    %207 = vector.shape_cast %200 : vector<1x8x1xi1> to vector<1x8x1xi1>
    %208 = vector.broadcast %207 : vector<1x8x1xi1> to vector<1x8x16xi1>
    %209 = vector.broadcast %cst_46 : f32 to vector<1x8x16xf32>
    %210 = arith.select %208, %182, %209 : vector<1x8x16xi1>, vector<1x8x16xf32>
    %cst_47 = arith.constant dense<0.000000e+00> : vector<1x16xf32>
    %211 = vector.multi_reduction <add>, %210, %cst_47 [1] : vector<1x8x16xf32> to vector<1x16xf32>
    %212 = vector.shape_cast %211 : vector<1x16xf32> to vector<1x1x16xf32>
    %cst_48 = arith.constant 0.000000e+00 : f32
    %213 = vector.broadcast %cst_48 : f32 to vector<1x8x1xf32>
    %214 = arith.select %200, %183, %213 : vector<1x8x1xi1>, vector<1x8x1xf32>
    %cst_49 = arith.constant dense<0.000000e+00> : vector<1x1xf32>
    %215 = vector.multi_reduction <add>, %214, %cst_49 [1] : vector<1x8x1xf32> to vector<1x1xf32>
    %216 = vector.shape_cast %215 : vector<1x1xf32> to vector<1x1x1xf32>
    %cst_50 = arith.constant 0.000000e+00 : f32
    %217 = vector.broadcast %cst_50 : f32 to vector<1x8x1xf32>
    %218 = arith.select %198, %183, %217 : vector<1x8x1xi1>, vector<1x8x1xf32>
    %cst_51 = arith.constant dense<0.000000e+00> : vector<1x1xf32>
    %219 = vector.multi_reduction <add>, %218, %cst_51 [1] : vector<1x8x1xf32> to vector<1x1xf32>
    %220 = vector.shape_cast %219 : vector<1x1xf32> to vector<1x1x1xf32>
    %221 = vector.shape_cast %200 : vector<1x8x1xi1> to vector<1x8x1xi1>
    %222 = vector.broadcast %221 : vector<1x8x1xi1> to vector<1x8x16xi1>
    %223 = vector.shape_cast %206 : vector<1x1x16xf32> to vector<1x1x16xf32>
    %224 = vector.broadcast %223 : vector<1x1x16xf32> to vector<1x8x16xf32>
    %225 = arith.select %222, %224, %182 : vector<1x8x16xi1>, vector<1x8x16xf32>
    %226 = vector.shape_cast %198 : vector<1x8x1xi1> to vector<1x8x1xi1>
    %227 = vector.broadcast %226 : vector<1x8x1xi1> to vector<1x8x16xi1>
    %228 = vector.shape_cast %212 : vector<1x1x16xf32> to vector<1x1x16xf32>
    %229 = vector.broadcast %228 : vector<1x1x16xf32> to vector<1x8x16xf32>
    %230 = arith.select %227, %229, %225 : vector<1x8x16xi1>, vector<1x8x16xf32>
    %231 = vector.broadcast %216 : vector<1x1x1xf32> to vector<1x1x16xf32>
    %232 = arith.divf %212, %231 : vector<1x1x16xf32>
    %233 = vector.shape_cast %198 : vector<1x8x1xi1> to vector<1x8x1xi1>
    %234 = vector.broadcast %233 : vector<1x8x1xi1> to vector<1x8x16xi1>
    %235 = vector.shape_cast %232 : vector<1x1x16xf32> to vector<1x1x16xf32>
    %236 = vector.broadcast %235 : vector<1x1x16xf32> to vector<1x8x16xf32>
    %237 = arith.select %234, %236, %230 : vector<1x8x16xi1>, vector<1x8x16xf32>
    %238 = vector.shape_cast %220 : vector<1x1x1xf32> to vector<1x1x1xf32>
    %239 = vector.broadcast %238 : vector<1x1x1xf32> to vector<1x8x1xf32>
    %240 = arith.select %200, %239, %183 : vector<1x8x1xi1>, vector<1x8x1xf32>
    %cst_52 = arith.constant 0.000000e+00 : f32
    %241 = vector.broadcast %cst_52 : f32 to vector<1x8x1xf32>
    %242 = arith.select %198, %241, %240 : vector<1x8x1xi1>, vector<1x8x1xf32>
    %243 = vector.broadcast %242 : vector<1x8x1xf32> to vector<1x8x16xf32>
    %244 = vector.broadcast %232 : vector<1x1x16xf32> to vector<1x8x16xf32>
    %245 = arith.mulf %243, %244 : vector<1x8x16xf32>
    %246 = arith.subf %237, %245 : vector<1x8x16xf32>
    %247 = vector.extract_strided_slice %246 {offsets = [0, 0, 3], sizes = [1, 8, 1], strides = [1, 1, 1]} : vector<1x8x16xf32> to vector<1x8x1xf32>
    %c3_i32 = arith.constant 3 : i32
    %248 = vector.broadcast %c3_i32 : i32 to vector<1x8x1xi32>
    %249 = arith.cmpi sge, %47, %248 : vector<1x8x1xi32>
    %250 = math.absf %247 : vector<1x8x1xf32>
    %cst_53 = arith.constant -1.000000e+00 : f32
    %251 = vector.broadcast %cst_53 : f32 to vector<1x8x1xf32>
    %252 = arith.select %249, %250, %251 : vector<1x8x1xi1>, vector<1x8x1xf32>
    %cst_54 = arith.constant dense<0xFF800000> : vector<1x1xf32>
    %253 = vector.multi_reduction <maximumf>, %252, %cst_54 [1] : vector<1x8x1xf32> to vector<1x1xf32>
    %254 = vector.shape_cast %253 : vector<1x1xf32> to vector<1x1x1xf32>
    %255 = vector.broadcast %254 : vector<1x1x1xf32> to vector<1x8x1xf32>
    %256 = arith.cmpf oeq, %252, %255 : vector<1x8x1xf32>
    %cst_55 = arith.constant 8.000000e+00 : f32
    %257 = vector.broadcast %cst_55 : f32 to vector<1x8x1xf32>
    %258 = arith.select %256, %48, %257 : vector<1x8x1xi1>, vector<1x8x1xf32>
    %cst_56 = arith.constant dense<0x7F800000> : vector<1x1xf32>
    %259 = vector.multi_reduction <minimumf>, %258, %cst_56 [1] : vector<1x8x1xf32> to vector<1x1xf32>
    %260 = vector.shape_cast %259 : vector<1x1xf32> to vector<1x1x1xf32>
    %c3_i32_57 = arith.constant 3 : i32
    %261 = vector.broadcast %c3_i32_57 : i32 to vector<1x8x1xi32>
    %262 = arith.cmpi eq, %47, %261 : vector<1x8x1xi32>
    %263 = vector.broadcast %260 : vector<1x1x1xf32> to vector<1x8x1xf32>
    %264 = arith.cmpf oeq, %48, %263 : vector<1x8x1xf32>
    %cst_58 = arith.constant 0.000000e+00 : f32
    %265 = vector.shape_cast %262 : vector<1x8x1xi1> to vector<1x8x1xi1>
    %266 = vector.broadcast %265 : vector<1x8x1xi1> to vector<1x8x16xi1>
    %267 = vector.broadcast %cst_58 : f32 to vector<1x8x16xf32>
    %268 = arith.select %266, %246, %267 : vector<1x8x16xi1>, vector<1x8x16xf32>
    %cst_59 = arith.constant dense<0.000000e+00> : vector<1x16xf32>
    %269 = vector.multi_reduction <add>, %268, %cst_59 [1] : vector<1x8x16xf32> to vector<1x16xf32>
    %270 = vector.shape_cast %269 : vector<1x16xf32> to vector<1x1x16xf32>
    %cst_60 = arith.constant 0.000000e+00 : f32
    %271 = vector.shape_cast %264 : vector<1x8x1xi1> to vector<1x8x1xi1>
    %272 = vector.broadcast %271 : vector<1x8x1xi1> to vector<1x8x16xi1>
    %273 = vector.broadcast %cst_60 : f32 to vector<1x8x16xf32>
    %274 = arith.select %272, %246, %273 : vector<1x8x16xi1>, vector<1x8x16xf32>
    %cst_61 = arith.constant dense<0.000000e+00> : vector<1x16xf32>
    %275 = vector.multi_reduction <add>, %274, %cst_61 [1] : vector<1x8x16xf32> to vector<1x16xf32>
    %276 = vector.shape_cast %275 : vector<1x16xf32> to vector<1x1x16xf32>
    %cst_62 = arith.constant 0.000000e+00 : f32
    %277 = vector.broadcast %cst_62 : f32 to vector<1x8x1xf32>
    %278 = arith.select %264, %247, %277 : vector<1x8x1xi1>, vector<1x8x1xf32>
    %cst_63 = arith.constant dense<0.000000e+00> : vector<1x1xf32>
    %279 = vector.multi_reduction <add>, %278, %cst_63 [1] : vector<1x8x1xf32> to vector<1x1xf32>
    %280 = vector.shape_cast %279 : vector<1x1xf32> to vector<1x1x1xf32>
    %cst_64 = arith.constant 0.000000e+00 : f32
    %281 = vector.broadcast %cst_64 : f32 to vector<1x8x1xf32>
    %282 = arith.select %262, %247, %281 : vector<1x8x1xi1>, vector<1x8x1xf32>
    %cst_65 = arith.constant dense<0.000000e+00> : vector<1x1xf32>
    %283 = vector.multi_reduction <add>, %282, %cst_65 [1] : vector<1x8x1xf32> to vector<1x1xf32>
    %284 = vector.shape_cast %283 : vector<1x1xf32> to vector<1x1x1xf32>
    %285 = vector.shape_cast %264 : vector<1x8x1xi1> to vector<1x8x1xi1>
    %286 = vector.broadcast %285 : vector<1x8x1xi1> to vector<1x8x16xi1>
    %287 = vector.shape_cast %270 : vector<1x1x16xf32> to vector<1x1x16xf32>
    %288 = vector.broadcast %287 : vector<1x1x16xf32> to vector<1x8x16xf32>
    %289 = arith.select %286, %288, %246 : vector<1x8x16xi1>, vector<1x8x16xf32>
    %290 = vector.shape_cast %262 : vector<1x8x1xi1> to vector<1x8x1xi1>
    %291 = vector.broadcast %290 : vector<1x8x1xi1> to vector<1x8x16xi1>
    %292 = vector.shape_cast %276 : vector<1x1x16xf32> to vector<1x1x16xf32>
    %293 = vector.broadcast %292 : vector<1x1x16xf32> to vector<1x8x16xf32>
    %294 = arith.select %291, %293, %289 : vector<1x8x16xi1>, vector<1x8x16xf32>
    %295 = vector.broadcast %280 : vector<1x1x1xf32> to vector<1x1x16xf32>
    %296 = arith.divf %276, %295 : vector<1x1x16xf32>
    %297 = vector.shape_cast %262 : vector<1x8x1xi1> to vector<1x8x1xi1>
    %298 = vector.broadcast %297 : vector<1x8x1xi1> to vector<1x8x16xi1>
    %299 = vector.shape_cast %296 : vector<1x1x16xf32> to vector<1x1x16xf32>
    %300 = vector.broadcast %299 : vector<1x1x16xf32> to vector<1x8x16xf32>
    %301 = arith.select %298, %300, %294 : vector<1x8x16xi1>, vector<1x8x16xf32>
    %302 = vector.shape_cast %284 : vector<1x1x1xf32> to vector<1x1x1xf32>
    %303 = vector.broadcast %302 : vector<1x1x1xf32> to vector<1x8x1xf32>
    %304 = arith.select %264, %303, %247 : vector<1x8x1xi1>, vector<1x8x1xf32>
    %cst_66 = arith.constant 0.000000e+00 : f32
    %305 = vector.broadcast %cst_66 : f32 to vector<1x8x1xf32>
    %306 = arith.select %262, %305, %304 : vector<1x8x1xi1>, vector<1x8x1xf32>
    %307 = vector.broadcast %306 : vector<1x8x1xf32> to vector<1x8x16xf32>
    %308 = vector.broadcast %296 : vector<1x1x16xf32> to vector<1x8x16xf32>
    %309 = arith.mulf %307, %308 : vector<1x8x16xf32>
    %310 = arith.subf %301, %309 : vector<1x8x16xf32>
    %311 = vector.extract_strided_slice %310 {offsets = [0, 0, 4], sizes = [1, 8, 1], strides = [1, 1, 1]} : vector<1x8x16xf32> to vector<1x8x1xf32>
    %c4_i32 = arith.constant 4 : i32
    %312 = vector.broadcast %c4_i32 : i32 to vector<1x8x1xi32>
    %313 = arith.cmpi sge, %47, %312 : vector<1x8x1xi32>
    %314 = math.absf %311 : vector<1x8x1xf32>
    %cst_67 = arith.constant -1.000000e+00 : f32
    %315 = vector.broadcast %cst_67 : f32 to vector<1x8x1xf32>
    %316 = arith.select %313, %314, %315 : vector<1x8x1xi1>, vector<1x8x1xf32>
    %cst_68 = arith.constant dense<0xFF800000> : vector<1x1xf32>
    %317 = vector.multi_reduction <maximumf>, %316, %cst_68 [1] : vector<1x8x1xf32> to vector<1x1xf32>
    %318 = vector.shape_cast %317 : vector<1x1xf32> to vector<1x1x1xf32>
    %319 = vector.broadcast %318 : vector<1x1x1xf32> to vector<1x8x1xf32>
    %320 = arith.cmpf oeq, %316, %319 : vector<1x8x1xf32>
    %cst_69 = arith.constant 8.000000e+00 : f32
    %321 = vector.broadcast %cst_69 : f32 to vector<1x8x1xf32>
    %322 = arith.select %320, %48, %321 : vector<1x8x1xi1>, vector<1x8x1xf32>
    %cst_70 = arith.constant dense<0x7F800000> : vector<1x1xf32>
    %323 = vector.multi_reduction <minimumf>, %322, %cst_70 [1] : vector<1x8x1xf32> to vector<1x1xf32>
    %324 = vector.shape_cast %323 : vector<1x1xf32> to vector<1x1x1xf32>
    %c4_i32_71 = arith.constant 4 : i32
    %325 = vector.broadcast %c4_i32_71 : i32 to vector<1x8x1xi32>
    %326 = arith.cmpi eq, %47, %325 : vector<1x8x1xi32>
    %327 = vector.broadcast %324 : vector<1x1x1xf32> to vector<1x8x1xf32>
    %328 = arith.cmpf oeq, %48, %327 : vector<1x8x1xf32>
    %cst_72 = arith.constant 0.000000e+00 : f32
    %329 = vector.shape_cast %326 : vector<1x8x1xi1> to vector<1x8x1xi1>
    %330 = vector.broadcast %329 : vector<1x8x1xi1> to vector<1x8x16xi1>
    %331 = vector.broadcast %cst_72 : f32 to vector<1x8x16xf32>
    %332 = arith.select %330, %310, %331 : vector<1x8x16xi1>, vector<1x8x16xf32>
    %cst_73 = arith.constant dense<0.000000e+00> : vector<1x16xf32>
    %333 = vector.multi_reduction <add>, %332, %cst_73 [1] : vector<1x8x16xf32> to vector<1x16xf32>
    %334 = vector.shape_cast %333 : vector<1x16xf32> to vector<1x1x16xf32>
    %cst_74 = arith.constant 0.000000e+00 : f32
    %335 = vector.shape_cast %328 : vector<1x8x1xi1> to vector<1x8x1xi1>
    %336 = vector.broadcast %335 : vector<1x8x1xi1> to vector<1x8x16xi1>
    %337 = vector.broadcast %cst_74 : f32 to vector<1x8x16xf32>
    %338 = arith.select %336, %310, %337 : vector<1x8x16xi1>, vector<1x8x16xf32>
    %cst_75 = arith.constant dense<0.000000e+00> : vector<1x16xf32>
    %339 = vector.multi_reduction <add>, %338, %cst_75 [1] : vector<1x8x16xf32> to vector<1x16xf32>
    %340 = vector.shape_cast %339 : vector<1x16xf32> to vector<1x1x16xf32>
    %cst_76 = arith.constant 0.000000e+00 : f32
    %341 = vector.broadcast %cst_76 : f32 to vector<1x8x1xf32>
    %342 = arith.select %328, %311, %341 : vector<1x8x1xi1>, vector<1x8x1xf32>
    %cst_77 = arith.constant dense<0.000000e+00> : vector<1x1xf32>
    %343 = vector.multi_reduction <add>, %342, %cst_77 [1] : vector<1x8x1xf32> to vector<1x1xf32>
    %344 = vector.shape_cast %343 : vector<1x1xf32> to vector<1x1x1xf32>
    %cst_78 = arith.constant 0.000000e+00 : f32
    %345 = vector.broadcast %cst_78 : f32 to vector<1x8x1xf32>
    %346 = arith.select %326, %311, %345 : vector<1x8x1xi1>, vector<1x8x1xf32>
    %cst_79 = arith.constant dense<0.000000e+00> : vector<1x1xf32>
    %347 = vector.multi_reduction <add>, %346, %cst_79 [1] : vector<1x8x1xf32> to vector<1x1xf32>
    %348 = vector.shape_cast %347 : vector<1x1xf32> to vector<1x1x1xf32>
    %349 = vector.shape_cast %328 : vector<1x8x1xi1> to vector<1x8x1xi1>
    %350 = vector.broadcast %349 : vector<1x8x1xi1> to vector<1x8x16xi1>
    %351 = vector.shape_cast %334 : vector<1x1x16xf32> to vector<1x1x16xf32>
    %352 = vector.broadcast %351 : vector<1x1x16xf32> to vector<1x8x16xf32>
    %353 = arith.select %350, %352, %310 : vector<1x8x16xi1>, vector<1x8x16xf32>
    %354 = vector.shape_cast %326 : vector<1x8x1xi1> to vector<1x8x1xi1>
    %355 = vector.broadcast %354 : vector<1x8x1xi1> to vector<1x8x16xi1>
    %356 = vector.shape_cast %340 : vector<1x1x16xf32> to vector<1x1x16xf32>
    %357 = vector.broadcast %356 : vector<1x1x16xf32> to vector<1x8x16xf32>
    %358 = arith.select %355, %357, %353 : vector<1x8x16xi1>, vector<1x8x16xf32>
    %359 = vector.broadcast %344 : vector<1x1x1xf32> to vector<1x1x16xf32>
    %360 = arith.divf %340, %359 : vector<1x1x16xf32>
    %361 = vector.shape_cast %326 : vector<1x8x1xi1> to vector<1x8x1xi1>
    %362 = vector.broadcast %361 : vector<1x8x1xi1> to vector<1x8x16xi1>
    %363 = vector.shape_cast %360 : vector<1x1x16xf32> to vector<1x1x16xf32>
    %364 = vector.broadcast %363 : vector<1x1x16xf32> to vector<1x8x16xf32>
    %365 = arith.select %362, %364, %358 : vector<1x8x16xi1>, vector<1x8x16xf32>
    %366 = vector.shape_cast %348 : vector<1x1x1xf32> to vector<1x1x1xf32>
    %367 = vector.broadcast %366 : vector<1x1x1xf32> to vector<1x8x1xf32>
    %368 = arith.select %328, %367, %311 : vector<1x8x1xi1>, vector<1x8x1xf32>
    %cst_80 = arith.constant 0.000000e+00 : f32
    %369 = vector.broadcast %cst_80 : f32 to vector<1x8x1xf32>
    %370 = arith.select %326, %369, %368 : vector<1x8x1xi1>, vector<1x8x1xf32>
    %371 = vector.broadcast %370 : vector<1x8x1xf32> to vector<1x8x16xf32>
    %372 = vector.broadcast %360 : vector<1x1x16xf32> to vector<1x8x16xf32>
    %373 = arith.mulf %371, %372 : vector<1x8x16xf32>
    %374 = arith.subf %365, %373 : vector<1x8x16xf32>
    %375 = vector.extract_strided_slice %374 {offsets = [0, 0, 5], sizes = [1, 8, 1], strides = [1, 1, 1]} : vector<1x8x16xf32> to vector<1x8x1xf32>
    %c5_i32 = arith.constant 5 : i32
    %376 = vector.broadcast %c5_i32 : i32 to vector<1x8x1xi32>
    %377 = arith.cmpi sge, %47, %376 : vector<1x8x1xi32>
    %378 = math.absf %375 : vector<1x8x1xf32>
    %cst_81 = arith.constant -1.000000e+00 : f32
    %379 = vector.broadcast %cst_81 : f32 to vector<1x8x1xf32>
    %380 = arith.select %377, %378, %379 : vector<1x8x1xi1>, vector<1x8x1xf32>
    %cst_82 = arith.constant dense<0xFF800000> : vector<1x1xf32>
    %381 = vector.multi_reduction <maximumf>, %380, %cst_82 [1] : vector<1x8x1xf32> to vector<1x1xf32>
    %382 = vector.shape_cast %381 : vector<1x1xf32> to vector<1x1x1xf32>
    %383 = vector.broadcast %382 : vector<1x1x1xf32> to vector<1x8x1xf32>
    %384 = arith.cmpf oeq, %380, %383 : vector<1x8x1xf32>
    %cst_83 = arith.constant 8.000000e+00 : f32
    %385 = vector.broadcast %cst_83 : f32 to vector<1x8x1xf32>
    %386 = arith.select %384, %48, %385 : vector<1x8x1xi1>, vector<1x8x1xf32>
    %cst_84 = arith.constant dense<0x7F800000> : vector<1x1xf32>
    %387 = vector.multi_reduction <minimumf>, %386, %cst_84 [1] : vector<1x8x1xf32> to vector<1x1xf32>
    %388 = vector.shape_cast %387 : vector<1x1xf32> to vector<1x1x1xf32>
    %c5_i32_85 = arith.constant 5 : i32
    %389 = vector.broadcast %c5_i32_85 : i32 to vector<1x8x1xi32>
    %390 = arith.cmpi eq, %47, %389 : vector<1x8x1xi32>
    %391 = vector.broadcast %388 : vector<1x1x1xf32> to vector<1x8x1xf32>
    %392 = arith.cmpf oeq, %48, %391 : vector<1x8x1xf32>
    %cst_86 = arith.constant 0.000000e+00 : f32
    %393 = vector.shape_cast %390 : vector<1x8x1xi1> to vector<1x8x1xi1>
    %394 = vector.broadcast %393 : vector<1x8x1xi1> to vector<1x8x16xi1>
    %395 = vector.broadcast %cst_86 : f32 to vector<1x8x16xf32>
    %396 = arith.select %394, %374, %395 : vector<1x8x16xi1>, vector<1x8x16xf32>
    %cst_87 = arith.constant dense<0.000000e+00> : vector<1x16xf32>
    %397 = vector.multi_reduction <add>, %396, %cst_87 [1] : vector<1x8x16xf32> to vector<1x16xf32>
    %398 = vector.shape_cast %397 : vector<1x16xf32> to vector<1x1x16xf32>
    %cst_88 = arith.constant 0.000000e+00 : f32
    %399 = vector.shape_cast %392 : vector<1x8x1xi1> to vector<1x8x1xi1>
    %400 = vector.broadcast %399 : vector<1x8x1xi1> to vector<1x8x16xi1>
    %401 = vector.broadcast %cst_88 : f32 to vector<1x8x16xf32>
    %402 = arith.select %400, %374, %401 : vector<1x8x16xi1>, vector<1x8x16xf32>
    %cst_89 = arith.constant dense<0.000000e+00> : vector<1x16xf32>
    %403 = vector.multi_reduction <add>, %402, %cst_89 [1] : vector<1x8x16xf32> to vector<1x16xf32>
    %404 = vector.shape_cast %403 : vector<1x16xf32> to vector<1x1x16xf32>
    %cst_90 = arith.constant 0.000000e+00 : f32
    %405 = vector.broadcast %cst_90 : f32 to vector<1x8x1xf32>
    %406 = arith.select %392, %375, %405 : vector<1x8x1xi1>, vector<1x8x1xf32>
    %cst_91 = arith.constant dense<0.000000e+00> : vector<1x1xf32>
    %407 = vector.multi_reduction <add>, %406, %cst_91 [1] : vector<1x8x1xf32> to vector<1x1xf32>
    %408 = vector.shape_cast %407 : vector<1x1xf32> to vector<1x1x1xf32>
    %cst_92 = arith.constant 0.000000e+00 : f32
    %409 = vector.broadcast %cst_92 : f32 to vector<1x8x1xf32>
    %410 = arith.select %390, %375, %409 : vector<1x8x1xi1>, vector<1x8x1xf32>
    %cst_93 = arith.constant dense<0.000000e+00> : vector<1x1xf32>
    %411 = vector.multi_reduction <add>, %410, %cst_93 [1] : vector<1x8x1xf32> to vector<1x1xf32>
    %412 = vector.shape_cast %411 : vector<1x1xf32> to vector<1x1x1xf32>
    %413 = vector.shape_cast %392 : vector<1x8x1xi1> to vector<1x8x1xi1>
    %414 = vector.broadcast %413 : vector<1x8x1xi1> to vector<1x8x16xi1>
    %415 = vector.shape_cast %398 : vector<1x1x16xf32> to vector<1x1x16xf32>
    %416 = vector.broadcast %415 : vector<1x1x16xf32> to vector<1x8x16xf32>
    %417 = arith.select %414, %416, %374 : vector<1x8x16xi1>, vector<1x8x16xf32>
    %418 = vector.shape_cast %390 : vector<1x8x1xi1> to vector<1x8x1xi1>
    %419 = vector.broadcast %418 : vector<1x8x1xi1> to vector<1x8x16xi1>
    %420 = vector.shape_cast %404 : vector<1x1x16xf32> to vector<1x1x16xf32>
    %421 = vector.broadcast %420 : vector<1x1x16xf32> to vector<1x8x16xf32>
    %422 = arith.select %419, %421, %417 : vector<1x8x16xi1>, vector<1x8x16xf32>
    %423 = vector.broadcast %408 : vector<1x1x1xf32> to vector<1x1x16xf32>
    %424 = arith.divf %404, %423 : vector<1x1x16xf32>
    %425 = vector.shape_cast %390 : vector<1x8x1xi1> to vector<1x8x1xi1>
    %426 = vector.broadcast %425 : vector<1x8x1xi1> to vector<1x8x16xi1>
    %427 = vector.shape_cast %424 : vector<1x1x16xf32> to vector<1x1x16xf32>
    %428 = vector.broadcast %427 : vector<1x1x16xf32> to vector<1x8x16xf32>
    %429 = arith.select %426, %428, %422 : vector<1x8x16xi1>, vector<1x8x16xf32>
    %430 = vector.shape_cast %412 : vector<1x1x1xf32> to vector<1x1x1xf32>
    %431 = vector.broadcast %430 : vector<1x1x1xf32> to vector<1x8x1xf32>
    %432 = arith.select %392, %431, %375 : vector<1x8x1xi1>, vector<1x8x1xf32>
    %cst_94 = arith.constant 0.000000e+00 : f32
    %433 = vector.broadcast %cst_94 : f32 to vector<1x8x1xf32>
    %434 = arith.select %390, %433, %432 : vector<1x8x1xi1>, vector<1x8x1xf32>
    %435 = vector.broadcast %434 : vector<1x8x1xf32> to vector<1x8x16xf32>
    %436 = vector.broadcast %424 : vector<1x1x16xf32> to vector<1x8x16xf32>
    %437 = arith.mulf %435, %436 : vector<1x8x16xf32>
    %438 = arith.subf %429, %437 : vector<1x8x16xf32>
    %439 = vector.extract_strided_slice %438 {offsets = [0, 0, 6], sizes = [1, 8, 1], strides = [1, 1, 1]} : vector<1x8x16xf32> to vector<1x8x1xf32>
    %c6_i32 = arith.constant 6 : i32
    %440 = vector.broadcast %c6_i32 : i32 to vector<1x8x1xi32>
    %441 = arith.cmpi sge, %47, %440 : vector<1x8x1xi32>
    %442 = math.absf %439 : vector<1x8x1xf32>
    %cst_95 = arith.constant -1.000000e+00 : f32
    %443 = vector.broadcast %cst_95 : f32 to vector<1x8x1xf32>
    %444 = arith.select %441, %442, %443 : vector<1x8x1xi1>, vector<1x8x1xf32>
    %cst_96 = arith.constant dense<0xFF800000> : vector<1x1xf32>
    %445 = vector.multi_reduction <maximumf>, %444, %cst_96 [1] : vector<1x8x1xf32> to vector<1x1xf32>
    %446 = vector.shape_cast %445 : vector<1x1xf32> to vector<1x1x1xf32>
    %447 = vector.broadcast %446 : vector<1x1x1xf32> to vector<1x8x1xf32>
    %448 = arith.cmpf oeq, %444, %447 : vector<1x8x1xf32>
    %cst_97 = arith.constant 8.000000e+00 : f32
    %449 = vector.broadcast %cst_97 : f32 to vector<1x8x1xf32>
    %450 = arith.select %448, %48, %449 : vector<1x8x1xi1>, vector<1x8x1xf32>
    %cst_98 = arith.constant dense<0x7F800000> : vector<1x1xf32>
    %451 = vector.multi_reduction <minimumf>, %450, %cst_98 [1] : vector<1x8x1xf32> to vector<1x1xf32>
    %452 = vector.shape_cast %451 : vector<1x1xf32> to vector<1x1x1xf32>
    %c6_i32_99 = arith.constant 6 : i32
    %453 = vector.broadcast %c6_i32_99 : i32 to vector<1x8x1xi32>
    %454 = arith.cmpi eq, %47, %453 : vector<1x8x1xi32>
    %455 = vector.broadcast %452 : vector<1x1x1xf32> to vector<1x8x1xf32>
    %456 = arith.cmpf oeq, %48, %455 : vector<1x8x1xf32>
    %cst_100 = arith.constant 0.000000e+00 : f32
    %457 = vector.shape_cast %454 : vector<1x8x1xi1> to vector<1x8x1xi1>
    %458 = vector.broadcast %457 : vector<1x8x1xi1> to vector<1x8x16xi1>
    %459 = vector.broadcast %cst_100 : f32 to vector<1x8x16xf32>
    %460 = arith.select %458, %438, %459 : vector<1x8x16xi1>, vector<1x8x16xf32>
    %cst_101 = arith.constant dense<0.000000e+00> : vector<1x16xf32>
    %461 = vector.multi_reduction <add>, %460, %cst_101 [1] : vector<1x8x16xf32> to vector<1x16xf32>
    %462 = vector.shape_cast %461 : vector<1x16xf32> to vector<1x1x16xf32>
    %cst_102 = arith.constant 0.000000e+00 : f32
    %463 = vector.shape_cast %456 : vector<1x8x1xi1> to vector<1x8x1xi1>
    %464 = vector.broadcast %463 : vector<1x8x1xi1> to vector<1x8x16xi1>
    %465 = vector.broadcast %cst_102 : f32 to vector<1x8x16xf32>
    %466 = arith.select %464, %438, %465 : vector<1x8x16xi1>, vector<1x8x16xf32>
    %cst_103 = arith.constant dense<0.000000e+00> : vector<1x16xf32>
    %467 = vector.multi_reduction <add>, %466, %cst_103 [1] : vector<1x8x16xf32> to vector<1x16xf32>
    %468 = vector.shape_cast %467 : vector<1x16xf32> to vector<1x1x16xf32>
    %cst_104 = arith.constant 0.000000e+00 : f32
    %469 = vector.broadcast %cst_104 : f32 to vector<1x8x1xf32>
    %470 = arith.select %456, %439, %469 : vector<1x8x1xi1>, vector<1x8x1xf32>
    %cst_105 = arith.constant dense<0.000000e+00> : vector<1x1xf32>
    %471 = vector.multi_reduction <add>, %470, %cst_105 [1] : vector<1x8x1xf32> to vector<1x1xf32>
    %472 = vector.shape_cast %471 : vector<1x1xf32> to vector<1x1x1xf32>
    %cst_106 = arith.constant 0.000000e+00 : f32
    %473 = vector.broadcast %cst_106 : f32 to vector<1x8x1xf32>
    %474 = arith.select %454, %439, %473 : vector<1x8x1xi1>, vector<1x8x1xf32>
    %cst_107 = arith.constant dense<0.000000e+00> : vector<1x1xf32>
    %475 = vector.multi_reduction <add>, %474, %cst_107 [1] : vector<1x8x1xf32> to vector<1x1xf32>
    %476 = vector.shape_cast %475 : vector<1x1xf32> to vector<1x1x1xf32>
    %477 = vector.shape_cast %456 : vector<1x8x1xi1> to vector<1x8x1xi1>
    %478 = vector.broadcast %477 : vector<1x8x1xi1> to vector<1x8x16xi1>
    %479 = vector.shape_cast %462 : vector<1x1x16xf32> to vector<1x1x16xf32>
    %480 = vector.broadcast %479 : vector<1x1x16xf32> to vector<1x8x16xf32>
    %481 = arith.select %478, %480, %438 : vector<1x8x16xi1>, vector<1x8x16xf32>
    %482 = vector.shape_cast %454 : vector<1x8x1xi1> to vector<1x8x1xi1>
    %483 = vector.broadcast %482 : vector<1x8x1xi1> to vector<1x8x16xi1>
    %484 = vector.shape_cast %468 : vector<1x1x16xf32> to vector<1x1x16xf32>
    %485 = vector.broadcast %484 : vector<1x1x16xf32> to vector<1x8x16xf32>
    %486 = arith.select %483, %485, %481 : vector<1x8x16xi1>, vector<1x8x16xf32>
    %487 = vector.broadcast %472 : vector<1x1x1xf32> to vector<1x1x16xf32>
    %488 = arith.divf %468, %487 : vector<1x1x16xf32>
    %489 = vector.shape_cast %454 : vector<1x8x1xi1> to vector<1x8x1xi1>
    %490 = vector.broadcast %489 : vector<1x8x1xi1> to vector<1x8x16xi1>
    %491 = vector.shape_cast %488 : vector<1x1x16xf32> to vector<1x1x16xf32>
    %492 = vector.broadcast %491 : vector<1x1x16xf32> to vector<1x8x16xf32>
    %493 = arith.select %490, %492, %486 : vector<1x8x16xi1>, vector<1x8x16xf32>
    %494 = vector.shape_cast %476 : vector<1x1x1xf32> to vector<1x1x1xf32>
    %495 = vector.broadcast %494 : vector<1x1x1xf32> to vector<1x8x1xf32>
    %496 = arith.select %456, %495, %439 : vector<1x8x1xi1>, vector<1x8x1xf32>
    %cst_108 = arith.constant 0.000000e+00 : f32
    %497 = vector.broadcast %cst_108 : f32 to vector<1x8x1xf32>
    %498 = arith.select %454, %497, %496 : vector<1x8x1xi1>, vector<1x8x1xf32>
    %499 = vector.broadcast %498 : vector<1x8x1xf32> to vector<1x8x16xf32>
    %500 = vector.broadcast %488 : vector<1x1x16xf32> to vector<1x8x16xf32>
    %501 = arith.mulf %499, %500 : vector<1x8x16xf32>
    %502 = arith.subf %493, %501 : vector<1x8x16xf32>
    %503 = vector.extract_strided_slice %502 {offsets = [0, 0, 7], sizes = [1, 8, 1], strides = [1, 1, 1]} : vector<1x8x16xf32> to vector<1x8x1xf32>
    %c7_i32 = arith.constant 7 : i32
    %504 = vector.broadcast %c7_i32 : i32 to vector<1x8x1xi32>
    %505 = arith.cmpi sge, %47, %504 : vector<1x8x1xi32>
    %506 = math.absf %503 : vector<1x8x1xf32>
    %cst_109 = arith.constant -1.000000e+00 : f32
    %507 = vector.broadcast %cst_109 : f32 to vector<1x8x1xf32>
    %508 = arith.select %505, %506, %507 : vector<1x8x1xi1>, vector<1x8x1xf32>
    %cst_110 = arith.constant dense<0xFF800000> : vector<1x1xf32>
    %509 = vector.multi_reduction <maximumf>, %508, %cst_110 [1] : vector<1x8x1xf32> to vector<1x1xf32>
    %510 = vector.shape_cast %509 : vector<1x1xf32> to vector<1x1x1xf32>
    %511 = vector.broadcast %510 : vector<1x1x1xf32> to vector<1x8x1xf32>
    %512 = arith.cmpf oeq, %508, %511 : vector<1x8x1xf32>
    %cst_111 = arith.constant 8.000000e+00 : f32
    %513 = vector.broadcast %cst_111 : f32 to vector<1x8x1xf32>
    %514 = arith.select %512, %48, %513 : vector<1x8x1xi1>, vector<1x8x1xf32>
    %cst_112 = arith.constant dense<0x7F800000> : vector<1x1xf32>
    %515 = vector.multi_reduction <minimumf>, %514, %cst_112 [1] : vector<1x8x1xf32> to vector<1x1xf32>
    %516 = vector.shape_cast %515 : vector<1x1xf32> to vector<1x1x1xf32>
    %c7_i32_113 = arith.constant 7 : i32
    %517 = vector.broadcast %c7_i32_113 : i32 to vector<1x8x1xi32>
    %518 = arith.cmpi eq, %47, %517 : vector<1x8x1xi32>
    %519 = vector.broadcast %516 : vector<1x1x1xf32> to vector<1x8x1xf32>
    %520 = arith.cmpf oeq, %48, %519 : vector<1x8x1xf32>
    %cst_114 = arith.constant 0.000000e+00 : f32
    %521 = vector.shape_cast %518 : vector<1x8x1xi1> to vector<1x8x1xi1>
    %522 = vector.broadcast %521 : vector<1x8x1xi1> to vector<1x8x16xi1>
    %523 = vector.broadcast %cst_114 : f32 to vector<1x8x16xf32>
    %524 = arith.select %522, %502, %523 : vector<1x8x16xi1>, vector<1x8x16xf32>
    %cst_115 = arith.constant dense<0.000000e+00> : vector<1x16xf32>
    %525 = vector.multi_reduction <add>, %524, %cst_115 [1] : vector<1x8x16xf32> to vector<1x16xf32>
    %526 = vector.shape_cast %525 : vector<1x16xf32> to vector<1x1x16xf32>
    %cst_116 = arith.constant 0.000000e+00 : f32
    %527 = vector.shape_cast %520 : vector<1x8x1xi1> to vector<1x8x1xi1>
    %528 = vector.broadcast %527 : vector<1x8x1xi1> to vector<1x8x16xi1>
    %529 = vector.broadcast %cst_116 : f32 to vector<1x8x16xf32>
    %530 = arith.select %528, %502, %529 : vector<1x8x16xi1>, vector<1x8x16xf32>
    %cst_117 = arith.constant dense<0.000000e+00> : vector<1x16xf32>
    %531 = vector.multi_reduction <add>, %530, %cst_117 [1] : vector<1x8x16xf32> to vector<1x16xf32>
    %532 = vector.shape_cast %531 : vector<1x16xf32> to vector<1x1x16xf32>
    %cst_118 = arith.constant 0.000000e+00 : f32
    %533 = vector.broadcast %cst_118 : f32 to vector<1x8x1xf32>
    %534 = arith.select %520, %503, %533 : vector<1x8x1xi1>, vector<1x8x1xf32>
    %cst_119 = arith.constant dense<0.000000e+00> : vector<1x1xf32>
    %535 = vector.multi_reduction <add>, %534, %cst_119 [1] : vector<1x8x1xf32> to vector<1x1xf32>
    %536 = vector.shape_cast %535 : vector<1x1xf32> to vector<1x1x1xf32>
    %cst_120 = arith.constant 0.000000e+00 : f32
    %537 = vector.broadcast %cst_120 : f32 to vector<1x8x1xf32>
    %538 = arith.select %518, %503, %537 : vector<1x8x1xi1>, vector<1x8x1xf32>
    %cst_121 = arith.constant dense<0.000000e+00> : vector<1x1xf32>
    %539 = vector.multi_reduction <add>, %538, %cst_121 [1] : vector<1x8x1xf32> to vector<1x1xf32>
    %540 = vector.shape_cast %539 : vector<1x1xf32> to vector<1x1x1xf32>
    %541 = vector.shape_cast %520 : vector<1x8x1xi1> to vector<1x8x1xi1>
    %542 = vector.broadcast %541 : vector<1x8x1xi1> to vector<1x8x16xi1>
    %543 = vector.shape_cast %526 : vector<1x1x16xf32> to vector<1x1x16xf32>
    %544 = vector.broadcast %543 : vector<1x1x16xf32> to vector<1x8x16xf32>
    %545 = arith.select %542, %544, %502 : vector<1x8x16xi1>, vector<1x8x16xf32>
    %546 = vector.shape_cast %518 : vector<1x8x1xi1> to vector<1x8x1xi1>
    %547 = vector.broadcast %546 : vector<1x8x1xi1> to vector<1x8x16xi1>
    %548 = vector.shape_cast %532 : vector<1x1x16xf32> to vector<1x1x16xf32>
    %549 = vector.broadcast %548 : vector<1x1x16xf32> to vector<1x8x16xf32>
    %550 = arith.select %547, %549, %545 : vector<1x8x16xi1>, vector<1x8x16xf32>
    %551 = vector.broadcast %536 : vector<1x1x1xf32> to vector<1x1x16xf32>
    %552 = arith.divf %532, %551 : vector<1x1x16xf32>
    %553 = vector.shape_cast %518 : vector<1x8x1xi1> to vector<1x8x1xi1>
    %554 = vector.broadcast %553 : vector<1x8x1xi1> to vector<1x8x16xi1>
    %555 = vector.shape_cast %552 : vector<1x1x16xf32> to vector<1x1x16xf32>
    %556 = vector.broadcast %555 : vector<1x1x16xf32> to vector<1x8x16xf32>
    %557 = arith.select %554, %556, %550 : vector<1x8x16xi1>, vector<1x8x16xf32>
    %558 = vector.shape_cast %540 : vector<1x1x1xf32> to vector<1x1x1xf32>
    %559 = vector.broadcast %558 : vector<1x1x1xf32> to vector<1x8x1xf32>
    %560 = arith.select %520, %559, %503 : vector<1x8x1xi1>, vector<1x8x1xf32>
    %cst_122 = arith.constant 0.000000e+00 : f32
    %561 = vector.broadcast %cst_122 : f32 to vector<1x8x1xf32>
    %562 = arith.select %518, %561, %560 : vector<1x8x1xi1>, vector<1x8x1xf32>
    %563 = vector.broadcast %562 : vector<1x8x1xf32> to vector<1x8x16xf32>
    %564 = vector.broadcast %552 : vector<1x1x16xf32> to vector<1x8x16xf32>
    %565 = arith.mulf %563, %564 : vector<1x8x16xf32>
    %566 = arith.subf %557, %565 : vector<1x8x16xf32>
    %567 = vector.extract_strided_slice %566 {offsets = [0, 0, 8], sizes = [1, 8, 8], strides = [1, 1, 1]} : vector<1x8x16xf32> to vector<1x8x8xf32>
    %568 = vector.extract_strided_slice %567 {offsets = [0, 0, 0], sizes = [1, 8, 1], strides = [1, 1, 1]} : vector<1x8x8xf32> to vector<1x8x1xf32>
    %569 = arith.mulf %16, %568 : vector<1x8x1xf32>
    %570 = arith.mulf %567, %28 : vector<1x8x8xf32>
    %cst_123 = arith.constant dense<0.000000e+00> : vector<1x8xf32>
    %571 = vector.multi_reduction <add>, %570, %cst_123 [2] : vector<1x8x8xf32> to vector<1x8xf32>
    %572 = vector.shape_cast %571 : vector<1x8xf32> to vector<1x8x1xf32>
    %573 = vector.broadcast %23 : vector<1x8x1xf32> to vector<1x8x8xf32>
    %574 = arith.mulf %573, %28 : vector<1x8x8xf32>
    %cst_124 = arith.constant dense<0.000000e+00> : vector<1x8xf32>
    %575 = vector.multi_reduction <add>, %574, %cst_124 [1] : vector<1x8x8xf32> to vector<1x8xf32>
    %576 = vector.shape_cast %575 : vector<1x8xf32> to vector<1x1x8xf32>
    %577 = vector.broadcast %576 : vector<1x1x8xf32> to vector<1x8x8xf32>
    %578 = arith.mulf %577, %30 : vector<1x8x8xf32>
    %c0_i32_125 = arith.constant 0 : i32
    %579 = vector.broadcast %c0_i32_125 : i32 to vector<1x8x8xi32>
    %580 = arith.cmpi ne, %24, %579 : vector<1x8x8xi32>
    %581 = arith.extui %580 : vector<1x8x8xi1> to vector<1x8x8xi32>
    %582 = arith.sitofp %581 : vector<1x8x8xi32> to vector<1x8x8xf32>
    %c0_i32_126 = arith.constant 0 : i32
    %583 = vector.broadcast %c0_i32_126 : i32 to vector<1x8x8xi32>
    %584 = arith.cmpi ne, %25, %583 : vector<1x8x8xi32>
    %585 = arith.extui %584 : vector<1x8x8xi1> to vector<1x8x8xi32>
    %586 = arith.sitofp %585 : vector<1x8x8xi32> to vector<1x8x8xf32>
    %587 = vector.broadcast %572 : vector<1x8x1xf32> to vector<1x8x8xf32>
    %588 = arith.mulf %578, %587 : vector<1x8x8xf32>
    %589 = arith.mulf %582, %588 : vector<1x8x8xf32>
    %590 = arith.mulf %578, %567 : vector<1x8x8xf32>
    %591 = arith.mulf %586, %590 : vector<1x8x8xf32>
    %592 = arith.subf %589, %591 : vector<1x8x8xf32>
    %593 = vector.shape_cast %592 : vector<1x8x8xf32> to vector<8x8xf32>
    %594 = tpu.transpose %593, [1, 0] : vector<8x8xf32> -> vector<8x8xf32>
    %595 = vector.shape_cast %594 : vector<8x8xf32> to vector<1x8x8xf32>
    %c0_127 = arith.constant 0 : index
    %c0_128 = arith.constant 0 : index
    %596 = vector.load %arg2[%c0_127, %c0_128] : memref<8x16xf32, #tpu.memory_space<vmem>>, vector<8x16xf32>
    %597 = vector.shape_cast %596 : vector<8x16xf32> to vector<1x8x16xf32>
    %598 = vector.shape_cast %4 : vector<1x16xf32> to vector<1x1x16xf32>
    %599 = vector.broadcast %569 : vector<1x8x1xf32> to vector<1x8x16xf32>
    %600 = vector.broadcast %598 : vector<1x1x16xf32> to vector<1x8x16xf32>
    %601 = arith.mulf %599, %600 : vector<1x8x16xf32>
    "tpu.trace_start"() <{level = 10 : i32, message = "bij,bjk->bik"}> : () -> ()
    %cst_129 = arith.constant dense<0.000000e+00> : vector<1x8x16xf32>
    %602 = tpu.matmul %592, %597, %cst_129 {dimension_numbers = #tpu.dot_dimension_numbers<[2], [1], [1], [2], [0, 0, 0, 1, 1, 2], [0], [0]>, precision = #tpu.contract_precision<fp32>} : vector<1x8x8xf32>, vector<1x8x16xf32>, vector<1x8x16xf32> -> vector<1x8x16xf32>
    "tpu.trace_stop"() : () -> ()
    %603 = arith.addf %601, %602 : vector<1x8x16xf32>
    "tpu.trace_start"() <{level = 10 : i32, message = "bij,bjk->bik"}> : () -> ()
    %cst_130 = arith.constant dense<0.000000e+00> : vector<1x8x16xf32>
    %604 = tpu.matmul %595, %597, %cst_130 {dimension_numbers = #tpu.dot_dimension_numbers<[2], [1], [1], [2], [0, 0, 0, 1, 1, 2], [0], [0]>, precision = #tpu.contract_precision<fp32>} : vector<1x8x8xf32>, vector<1x8x16xf32>, vector<1x8x16xf32> -> vector<1x8x16xf32>
    "tpu.trace_stop"() : () -> ()
    %605 = tpu.concatenate %597, %603, %604 in 2 : vector<1x8x16xf32>, vector<1x8x16xf32>, vector<1x8x16xf32> -> vector<1x8x48xf32>
    %606 = vector.shape_cast %605 : vector<1x8x48xf32> to vector<8x48xf32>
    %c0_131 = arith.constant 0 : index
    %c0_132 = arith.constant 0 : index
    %607 = vector.load %arg4[%c0_131, %c0_132] : memref<48x32xf32, #tpu.memory_space<vmem>>, vector<48x32xf32>
    %cst_133 = arith.constant dense<0.000000e+00> : vector<8x32xf32>
    %608 = tpu.matmul %606, %607, %cst_133 {dimension_numbers = #tpu.dot_dimension_numbers<[1], [0], [0], [1], [0, 0, 1, 1], [], []>, precision = #tpu.contract_precision<fp32>} : vector<8x48xf32>, vector<48x32xf32>, vector<8x32xf32> -> vector<8x32xf32>
    %609 = vector.broadcast %5 : vector<1x32xf32> to vector<8x32xf32>
    %610 = arith.addf %608, %609 : vector<8x32xf32>
    %cst_134 = arith.constant 0.000000e+00 : f32
    %611 = vector.broadcast %cst_134 : f32 to vector<8x32xf32>
    %612 = arith.maximumf %610, %611 : vector<8x32xf32>
    %613 = tpu.concatenate %569, %592 in 2 : vector<1x8x1xf32>, vector<1x8x8xf32> -> vector<1x8x9xf32>
    %614 = vector.shape_cast %613 : vector<1x8x9xf32> to vector<8x9xf32>
    %cst_135 = arith.constant 0.000000e+00 : f32
    %615 = vector.broadcast %cst_135 : f32 to vector<8x7xf32>
    %616 = tpu.concatenate %612, %614, %615 in 1 : vector<8x32xf32>, vector<8x9xf32>, vector<8x7xf32> -> vector<8x48xf32>
    %c0_136 = arith.constant 0 : index
    %c0_137 = arith.constant 0 : index
    %617 = vector.load %arg6[%c0_136, %c0_137] : memref<8x48xf32, #tpu.memory_space<vmem>>, vector<8x48xf32>
    tpu.vector_store %arg6[%c0_136, %c0_137], %616 {strides = array<i32>} : memref<8x48xf32, #tpu.memory_space<vmem>>, vector<8x48xf32>,
    return
  }
  func.func @transform_0(%arg0: i32) -> (i32, i32) {
    %c0_i32 = arith.constant 0 : i32
    %c0_i32_0 = arith.constant 0 : i32
    return %arg0, %c0_i32 : i32, i32
  }
  func.func @transform_1(%arg0: i32) -> (i32, i32) {
    %c0_i32 = arith.constant 0 : i32
    %c0_i32_0 = arith.constant 0 : i32
    return %arg0, %c0_i32 : i32, i32
  }
  func.func @transform_2(%arg0: i32) -> (i32, i32) {
    %c0_i32 = arith.constant 0 : i32
    %c0_i32_0 = arith.constant 0 : i32
    %c0_i32_1 = arith.constant 0 : i32
    return %c0_i32, %c0_i32_0 : i32, i32
  }
  func.func @transform_3(%arg0: i32) -> (i32, i32) {
    %c0_i32 = arith.constant 0 : i32
    %c0_i32_0 = arith.constant 0 : i32
    %c0_i32_1 = arith.constant 0 : i32
    return %c0_i32, %c0_i32_0 : i32, i32
  }
  func.func @transform_4(%arg0: i32) -> (i32, i32) {
    %c0_i32 = arith.constant 0 : i32
    %c0_i32_0 = arith.constant 0 : i32
    %c0_i32_1 = arith.constant 0 : i32
    return %c0_i32, %c0_i32_0 : i32, i32
  }
  func.func @transform_5(%arg0: i32) -> (i32, i32) {
    %c0_i32 = arith.constant 0 : i32
    %c0_i32_0 = arith.constant 0 : i32
    return %arg0, %c0_i32 : i32, i32
  }
}

</mosaic_0001>

<bundles_post_ra>
// kernel: tpu_custom_call.1
= control target key start
LH: loop header
LB: loop body
LE: loop exit
PB: predicated region body
PF: predicated region fallthrough
CT: control target
= control target key end

     0   :  { %10 = vsyncpa [#allocation3], 0  ;;  %s4802_s0 = inlined_call_operand.vmem [shape: f32[16,16], index: 0, kind: input, shape index: {}]   ;;  %s4803_s1 = inlined_call_operand.vmem [shape: f32[16,16], index: 1, kind: input, shape index: {}]   ;;  %s4804_s2 = inlined_call_operand.vmem [shape: f32[16,49], index: 2, kind: input, shape index: {}]   ;;  %s4805_s3 = inlined_call_operand.vmem [shape: f32[48,32], index: 3, kind: input, shape index: {}]   ;;  %s4806_s4 = inlined_call_operand.vmem [shape: f32[1,80], index: 4, kind: input, shape index: {}]   ;;  %s4807_s5 = inlined_call_operand.hbm [shape: f32[16,48], index: 5, kind: output, shape index: {}]  }
   0x1   :  { %12 = vsyncpa [#allocation3 + $0x1], 0  ;;  %s4186_s18 = smov 0   ;;  %s4188_s19 = smov 0  }
   0x2   :  { %s4190_s20 = smov 0   ;;  %s4192_s21 = smov 0  }
   0x3 LB: > { %s4207_s22 = sadd.s32 4294967295, %s4132_s21   ;;  %s3478_s23 = sadd.s32 4294967294, %s4132_s21   ;;  %s4132_s21 = sphi %s4192_s21, %s4813_s21   ;;  %s4128_s20 = sphi %s4190_s20, %s4812_s20   ;;  %s4124_s19 = sphi %s4188_s19, %s4811_s19   ;;  %s4120_s18 = sphi %s4186_s18, %s4810_s18  }
   0x4   : > { %s4211_s24 = sadd.s32 1, %s4132_s21   ;;  %s140_s25 = sadd.s32 1, %s4128_s20 }
   0x5   : > { %s137_s26 = ssub.s32 %s4132_s21, %s4211_s24  ;;  %p150_p0 = scmp.ne.s32.totalorder %s4128_s20, %s4124_s19 }
   0x6   : > { %p138_p1 = scmp.eq.s32.totalorder %s137_s26, 0  ;;  %p151_p2 = scmp.eq.s32.totalorder %s4207_s22, 1 }
   0x7   : > { %p156_p3 = scmp.ne.s32.totalorder %s4124_s19, %s4120_s18  ;;  %p157_p4 = scmp.eq.s32.totalorder %s3478_s23, 1 }
   0x8   : > { %s4222_s27 = scalar_select %p138_p1, %s4128_s20, %s140_s25  }
   0x9   : > { %p4224_p5 = por %p151_p2, %p150_p0  ;;  %p4228_p6 = por %p157_p4, %p156_p3 }
   0xa   : > { %p3481_p7 = scmp.ge.s32.totalorder %s4132_s21, 1  ;;  %p198_p8 = scmp.lt.s32.totalorder %s4132_s21, 3 }
   0xc   : > { %p199_p9 = pnand %p3481_p7, %p198_p8 }
   0xd   : > { %v238_v0 = vld [vmem:[%s4804_s2] sm:$0xff] (!%p199_p9)  ;;  %v239_v1 = vld [vmem:[%s4804_s2 + $0x8] sm:$0xff] (!%p199_p9)  ;;  %p229_p10 = scmp.lt.s32.totalorder (!%p199_p9), %s4207_s22, 1  ;;  %v4134_v2 = vmov (!%p199_p9), 0.0|0.0   ;;  %vm4135_vm0 = vmmov (!%p199_p9), 0   ;;  %v4136_v5 = vmov (!%p199_p9), 0.0   ;;  %v1193_v57 = vlaneseq (!%p199_p9) }
   0xe   : > { %202 = sbr.rel (%p199_p9) target bundleno = 3314 (0xcf2), region = 40  ;;  %3829 = vmatprep.subr.bf16.mxu0 (!%p199_p9), %v4134_v2  ;;  %v246_v3 = vand.u32 (!%p199_p9), 4294901760, %v238_v0  ;;  %v249_v4 = vand.u32 (!%p199_p9), 4294901760, %v239_v1  ;;  %3599 = vmatprep.mubr.msk.f32.mxu0 (!%p199_p9), %vm4135_vm0, %v4136_v5  ;;  %s4137_s10 = smov (!%p199_p9), 95   ;;  %vm241_vm1 = vcmask (!%p199_p9), 130048   ;;  %v4138_v32 = vmov (!%p199_p9), 32  }
   0xf   : > { %716 = vrot.lane.b32.xlu0 (!%p199_p9), %v238_v0, %s4137_s10  ;;  %3847 = vmatprep.subr.bf16.mxu1 (!%p199_p9), %v4134_v2  ;;  %v3485_v44 = vld [vmem:[%s4806_s4] ss:$0 sm:$0xff] (!%p199_p9)  ;;  %s4139_s26 = smov (!%p199_p9), 112   ;;  %v4316_v58 = vshrl.u32 (!%p199_p9), %v1193_v57, 7  ;;  %v4318_v59 = vand.u32 (!%p199_p9), 127, %v1193_v57  ;;  %s4140_s30 = smov (!%p199_p9), 8  }
  0x10   : > { %v3830_v6 = vpack.c.bf16 (!%p199_p9), %v249_v4, %v246_v3  ;;  %v324_v7 = vsub.f32 (!%p199_p9), %v238_v0, %v246_v3  ;;  %v331_v8 = vsub.f32 (!%p199_p9), %v239_v1, %v249_v4  ;;  %3641 = vmatprep.mubr.msk.f32.mxu1 (!%p199_p9), %vm4135_vm0, %v4136_v5  ;;  %4029 = vset.pattern.permute.xlu0 (!%p199_p9), %v4138_v32  ;;  %v4141_v3 = vmov (!%p199_p9), 0   ;;  %s4149_s6 = smov (!%p199_p9), 120   ;;  %s4150_s7 = smov (!%p199_p9), 24  }
  0x11   : > { %vm1197_vm2 = vcmp.eq.s32.totalorder (!%p199_p9), %v4316_v58, %v4318_v59  ;;  %vm1202_vm3 = vcmask (!%p199_p9), 64512   ;;  %vm1225_vm4 = vcmp.eq.s32.totalorder (!%p199_p9), %v4316_v58, 0  ;;  %vm1236_vm5 = vcmask (!%p199_p9), 7168   ;;  %s4151_s8 = smov (!%p199_p9), 32   ;;  %s3490_s12 = sshll.u32 (!%p199_p9), %s4207_s22, 7 }
  0x12   : > { %3831 = vmatpush3.bf16.msra.mxu0 (!%p199_p9), %v3830_v6  ;;  %v325_v9 = vand.u32 (!%p199_p9), 4294901760, %v324_v7  ;;  %v332_v10 = vand.u32 (!%p199_p9), 4294901760, %v331_v8  ;;  %v3836_v23 = vpack.c.bf16 (!%p199_p9), %v331_v8, %v324_v7  ;;  %v3486_v60 = vsel (!%p199_p9), %vm1197_vm2, 1.0, %v4136_v5  ;;  %s4155_s25 = smov (!%p199_p9), [#allocation2]  }
  0x13   : > { %3832 = vmatprep.subr.bf16.mxu0 (!%p199_p9), %v4134_v2  ;;  %718 = vrot.lane.b32.xlu0 (!%p199_p9), %v239_v1, %s4137_s10  ;;  %vm1311_vm9 = vcmp.ge.s32.totalorder (!%p199_p9), %v4316_v58, 1  ;;  %vm1314_vm10 = vcmask (!%p199_p9), 15368   ;;  %vm1331_vm11 = vcmp.eq.s32.totalorder (!%p199_p9), %v4316_v58, 1  ;;  %vm1390_vm15 = vcmp.ge.s32.totalorder (!%p199_p9), %v4316_v58, 2  ;;  %s4154_s10 = smov (!%p199_p9), 80  }
  0x14   : > { %v326_v13 = vsub.f32 (!%p199_p9), %v324_v7, %v325_v9  ;;  %v333_v14 = vsub.f32 (!%p199_p9), %v331_v8, %v332_v10  ;;  %v3842_v24 = vpack.c.bf16 (!%p199_p9), %v332_v10, %v325_v9  ;;  %v1200_v10 = vsub.f32 (!%p199_p9), 1.0, %v3486_v60 }
  0x15   : > { %s4245_s9 = scalar_select %p229_p10, %s4207_s22, 1  ;;  %vm1410_vm2 = vcmp.eq.s32.totalorder %v4316_v58, 2 }
  0x16   : > { %v327_v17 = vand.u32 4294901760, %v326_v13  ;;  %v334_v18 = vand.u32 4294901760, %v333_v14 }
  0x17   : > { %s3483_s11 = sshll.u32 %s4245_s9, 3  ;;  %s4153_s9 = smov 1  }
  0x18   : > { %s232_s14 = scalar_lea.vmem %s4802_s0, %s3483_s11  ;;  %v3833_v21 = vpack.c.bf16 %v334_v18, %v327_v17  ;;  %s4275_s17 = scalar_lea.vmem %s4803_s1, %s3483_s11 }
  0x19   : > { %v237_v11 = vld [vmem:[%s232_s14] sm:$0xff] }
  0x1a   : > { %v243_v12 = vsel %vm241_vm1, %v237_v11, 0  ;;  %v1932_v25 = vld [vmem:[%s4275_s17] sm:$0xff] }
  0x1b   : > { %v312_v15 = vand.u32 4294901760, %v243_v12  ;;  %v4281_v26 = vand.u32 4294901760, %v1932_v25 }
  0x1d   : > { %v313_v16 = vsub.f32 %v243_v12, %v312_v15 }
  0x1f   : > { %v314_v19 = vand.u32 4294901760, %v313_v16 }
  0x21   : > { %v315_v20 = vsub.f32 %v313_v16, %v314_v19 }
  0x23   : > { %v316_v22 = vand.u32 4294901760, %v315_v20 }
  0x25   : > { %3600 = vmatmul.mubr.f32.vlgmr.msra.gmra.mrb[0].mxu0 %v316_v22 }
  0x26   : > { %3834 = vmatpush3.bf16.msra.mxu0 %v3833_v21  ;;  %3606 = vmatprep.mubr.msk.f32.mxu0 %vm4135_vm0, %v4136_v5 }
  0x27   : > { %3835 = vmatprep.subr.bf16.mxu0 %v4134_v2 }
  0x2d   : > { %3607 = vmatmul.mubr.f32.vlgmr.msra.gmra.mrb[0].mxu0 %v312_v15 }
  0x2e   : > { %3837 = vmatpush3.bf16.msra.mxu0 %v3836_v23  ;;  %3613 = vmatprep.mubr.msk.f32.mxu0 %vm4135_vm0, %v4136_v5 }
  0x2f   : > { %3838 = vmatprep.subr.bf16.mxu0 %v4134_v2 }
  0x35   : > { %3614 = vmatmul.mubr.f32.vlgmr.msra.gmra.mrb[0].mxu0 %v313_v16 }
  0x36   : > { %3840 = vmatpush3.bf16.msra.mxu0 %v3830_v6  ;;  %3620 = vmatprep.mubr.msk.f32.mxu0 %vm4135_vm0, %v4136_v5 }
  0x37   : > { %3841 = vmatprep.subr.bf16.mxu0 %v4134_v2 }
  0x3d   : > { %3621 = vmatmul.mubr.f32.vlgmr.msra.gmra.mrb[0].mxu0 %v314_v19 }
  0x3e   : > { %3843 = vmatpush3.bf16.msra.mxu0 %v3842_v24  ;;  %3627 = vmatprep.mubr.msk.f32.mxu0 %vm4135_vm0, %v4136_v5 }
  0x3f   : > { %3844 = vmatprep.subr.bf16.mxu0 %v4134_v2 }
  0x45   : > { %3628 = vmatmul.mubr.f32.vlgmr.msra.gmra.mrb[0].mxu0 %v312_v15 }
  0x46   : > { %3846 = vmatpush3.bf16.msra.mxu0 %v3830_v6  ;;  %3634 = vmatprep.mubr.msk.f32.mxu0 %vm4135_vm0, %v4136_v5 }
  0x47   : > { %3679 = vmatprep.subr.mxu0 %v4136_v5 }
  0x4d   : > { %3635 = vmatmul.mubr.f32.vlgmr.msra.gmra.mrb[0].mxu0 %v312_v15 }
  0x4e   : > { %3680 = vmatpush3.msra.mxu0 %v4281_v26  ;;  %3681 = vmatprep.mubr.msk.f32.mxu0 %vm4135_vm0, %v4136_v5 }
  0x4f   : > { %3684 = vmatprep.subr.mxu0 %v4136_v5 }
  0x81   : > { %v717_v27 = vpop.permute.xlu0 %716 }
  0x82   : > { %v726_v28 = vand.u32 4294901760, %v717_v27 }
  0x84   : > { %v804_v29 = vsub.f32 %v717_v27, %v726_v28 }
  0x85   : > { %v719_v30 = vpop.permute.xlu0 %718 }
  0x86   : > { %v729_v31 = vand.u32 4294901760, %v719_v30  ;;  %v805_v35 = vand.u32 4294901760, %v804_v29 }
  0x88   : > { %v3848_v33 = vpack.c.bf16 %v729_v31, %v726_v28  ;;  %v811_v34 = vsub.f32 %v719_v30, %v729_v31  ;;  %v806_v38 = vsub.f32 %v804_v29, %v805_v35 }
  0x8a   : > { %v812_v36 = vand.u32 4294901760, %v811_v34  ;;  %v3854_v37 = vpack.c.bf16 %v811_v34, %v804_v29  ;;  %3849 = vmatpush3.bf16.msra.mxu1 %v3848_v33  ;;  %v807_v40 = vand.u32 4294901760, %v806_v38 }
  0x8b   : > { %3850 = vmatprep.subr.bf16.mxu1 %v4134_v2 }
  0x8c   : > { %v813_v39 = vsub.f32 %v811_v34, %v812_v36  ;;  %v3860_v42 = vpack.c.bf16 %v812_v36, %v805_v35 }
  0x8e   : > { %v814_v41 = vand.u32 4294901760, %v813_v39 }
  0x90   : > { %v3851_v43 = vpack.c.bf16 %v814_v41, %v807_v40 }
 0x120   : > { %v700_v45 = vpop.f32.mrb[0].mxu0 }
 0x121   : > { %v710_v46 = vadd.f32 %v3485_v44, %v700_v45  ;;  %v712_v47 = vmul.f32 1.442695, %v700_v45  ;;  %v3636_v48 = vpop.f32.mrb[1].mxu0 }
 0x123   : > { %4046 = vtanh.f32 %v710_v46 }
 0x124   : > { %4048 = vpow2.f32 %v712_v47 }
 0x12d   : > { %v4047_v49 = vpop.eup %4046 }
 0x12e   : > { %v4292_v50 = vpop.eup %4048  ;;  %1184 = vrot.lane.b32.xlu1 %v4047_v49, %s4139_s26  ;;  %v723_v51 = vsel %vm241_vm1, %v4047_v49, 0  ;;  %v4342_v49 = vcvt.s32.f32 %v4316_v58 }
 0x12f   : > { %1214 = vperm.xlu0 %4029, %v4292_v50   ;;  %v792_v52 = vand.u32 4294901760, %v723_v51 }
 0x131   : > { %v793_v53 = vsub.f32 %v723_v51, %v792_v52 }
 0x133   : > { %v794_v54 = vand.u32 4294901760, %v793_v53  ;;  %1229 = vrot.lane.b32.xlu0 %v3486_v60, %s4140_s30  ;;  %s4074_s30 = sshll.u32 %s4155_s25, 4  ;;  %s4075_s30 = int_to_ptr.vmem [resolvable:$false] %s4074_s30 }
 0x134   : > { %4030 = vset.pattern.permute.xlu0 %v4141_v3 }
 0x135   : > { %v795_v55 = vsub.f32 %v793_v53, %v794_v54 }
 0x137   : > { %v796_v56 = vand.u32 4294901760, %v795_v55 }
 0x139   : > { %3642 = vmatmul.mubr.f32.vlgmr.msra.gmra.mrb[0].mxu1 %v796_v56 }
 0x13a   : > { %3852 = vmatpush3.bf16.msra.mxu1 %v3851_v43  ;;  %3648 = vmatprep.mubr.msk.f32.mxu1 %vm4135_vm0, %v4136_v5 }
 0x13b   : > { %3853 = vmatprep.subr.bf16.mxu1 %v4134_v2 }
 0x141   : > { %3649 = vmatmul.mubr.f32.vlgmr.msra.gmra.mrb[0].mxu1 %v792_v52 }
 0x142   : > { %3855 = vmatpush3.bf16.msra.mxu1 %v3854_v37  ;;  %3655 = vmatprep.mubr.msk.f32.mxu1 %vm4135_vm0, %v4136_v5 }
 0x143   : > { %3856 = vmatprep.subr.bf16.mxu1 %v4134_v2 }
 0x149   : > { %3656 = vmatmul.mubr.f32.vlgmr.msra.gmra.mrb[0].mxu1 %v793_v53 }
 0x14a   : > { %3858 = vmatpush3.bf16.msra.mxu1 %v3848_v33  ;;  %3662 = vmatprep.mubr.msk.f32.mxu1 %vm4135_vm0, %v4136_v5 }
 0x14b   : > { %3859 = vmatprep.subr.bf16.mxu1 %v4134_v2 }
 0x151   : > { %3663 = vmatmul.mubr.f32.vlgmr.msra.gmra.mrb[0].mxu1 %v794_v54 }
 0x152   : > { %3861 = vmatpush3.bf16.msra.mxu1 %v3860_v42  ;;  %3669 = vmatprep.mubr.msk.f32.mxu1 %vm4135_vm0, %v4136_v5 }
 0x153   : > { %3862 = vmatprep.subr.bf16.mxu1 %v4134_v2 }
 0x159   : > { %3670 = vmatmul.mubr.f32.vlgmr.msra.gmra.mrb[0].mxu1 %v792_v52 }
 0x15a   : > { %3864 = vmatpush3.bf16.msra.mxu1 %v3848_v33  ;;  %3676 = vmatprep.mubr.msk.f32.mxu1 %vm4135_vm0, %v4136_v5 }
 0x15b   : > { %3709 = vmatprep.subr.mxu1 %v4136_v5 }
 0x161   : > { %3677 = vmatmul.mubr.f32.vlgmr.msra.gmra.mrb[0].mxu1 %v792_v52 }
 0x162   : > { %3710 = vmatpush3.msra.mxu1 %v4281_v26  ;;  %3711 = vmatprep.mubr.msk.f32.mxu1 %vm4135_vm0, %v4136_v5 }
 0x163   : > { %3714 = vmatprep.subr.mxu1 %v4136_v5 }
 0x1a0   : > { %v1185_v61 = vpop.permute.xlu1 %1184 }
 0x1ae   : > { %v1215_v6 = vpop.permute.xlu0 %1214 }
 0x1af   : > { %v1217_v8 = vmul.f32 %v3486_v60, %v1215_v6 }
 0x1b1   : > { %v1218_v9 = vsel %vm1202_vm3, %v1217_v8, 0.0 }
 0x1b2   : > { %v1219_v11 = vrot.slane %v1218_v9, 4  ;;  %v4331_v38 = vpop.permute.xlu0 %1229 }
 0x1b4   : > { %v1220_v15 = vadd.f32 %v1219_v11, %v1218_v9 }
 0x1b6   : > { %v1221_v20 = vrot.slane %v1220_v15, 2 }
 0x1b8   : > { %v1222_v25 = vadd.f32 %v1221_v20, %v1220_v15  ;;  %v4142_v20 = vmov 1  }
 0x1b9   : > { %4032 = vset.pattern.permute.xlu1 %v4142_v20 }
 0x1ba   : > { %v1223_v31 = vrot.slane %v1222_v25, 1 }
 0x1bc   : > { %v1224_v37 = vadd.f32 %v1223_v31, %v1222_v25 }
 0x234   : > { %v1180_v62 = vpop.f32.mrb[0].mxu1 }
 0x235   : > { %v1187_v63 = vmul.f32 %v1185_v61, %v1180_v62  ;;  %v3678_v0 = vpop.f32.mrb[1].mxu1 }
 0x237   : > { %v1188_v1 = vsel %vm241_vm1, %v1187_v63, 0.0 }
 0x238   : > { %1189 = vadd.xlane.f32.xlu1 %v1188_v1 }
 0x2c5   : > { %v1190_v4 = vpop.xlane.xlu1 %1189 }
 0x2c6   : > { %v1191_v7 = vmul.f32 1.442695, %v1190_v4 }
 0x2c8   : > { %4050 = vpow2.f32 %v1191_v7 }
 0x2d2   : > { %v4051_v12 = vpop.eup %4050 }
 0x2d3   : > { %v1201_v13 = vmul.f32 %v4051_v12, %v1200_v10  ;;  %v1877_v14 = vmul.f32 %v4051_v12, %v3486_v60 }
 0x2d5   : > { %v1203_v16 = vsel %vm1202_vm3, %v1201_v13, 0.0  ;;  %v1878_v17 = vsel %vm1202_vm3, %v1877_v14, 0.0 }
 0x2d6   : > { %v1204_v18 = vrot.slane %v1203_v16, 4  ;;  %v1879_v19 = vrot.slane %v1878_v17, 4 }
 0x2d8   : > { %v1205_v21 = vadd.f32 %v1204_v18, %v1203_v16  ;;  %v1880_v22 = vadd.f32 %v1879_v19, %v1878_v17 }
 0x2da   : > { %v1206_v23 = vrot.slane %v1205_v21, 2  ;;  %v1881_v24 = vrot.slane %v1880_v22, 2 }
 0x2dc   : > { %v1207_v27 = vadd.f32 %v1206_v23, %v1205_v21  ;;  %v1882_v28 = vadd.f32 %v1881_v24, %v1880_v22 }
 0x2de   : > { %v1208_v29 = vrot.slane %v1207_v27, 1  ;;  %v1883_v30 = vrot.slane %v1882_v28, 1 }
 0x2e0   : > { %v1209_v33 = vadd.f32 %v1208_v29, %v1207_v27  ;;  %v1884_v34 = vadd.f32 %v1883_v30, %v1882_v28 }
 0x2e2   : > { %v1210_v35 = vmul.f32 %v3486_v60, %v1209_v33  ;;  %v4328_v36 = vmul.f32 %v1884_v34, %v1200_v10 }
 0x2e4   : > { %v1211_v39 = vsub.f32 %v1210_v35, %v1201_v13 }
 0x2e6   : > { %v1226_v40 = vsel %vm1225_vm4, %v1224_v37, %v1211_v39 }
 0x2e7   : > { %v4337_v41 = vsel %vm1202_vm3, %v1226_v40, %v4331_v38 }
 0x2e8   : > { %v1234_v42 = vand.u32 2147483647, %v4337_v41  ;;  %v1256_v53 = vsel %vm1225_vm4, %v4337_v41, 0.0 }
 0x2e9   : > { %v1286_v56 = vsel %vm1236_vm5, %v1256_v53, 0.0  ;;  %v1257_v22 = vsel %vm241_vm1, %v1256_v53, 0.0 }
 0x2ea   : > { %v1237_v43 = vsel %vm1236_vm5, %v1234_v42, -inf  ;;  %v1287_v61 = vrot.slane %v1286_v56, 4  ;;  %v1258_v25 = vrot.slane %v1257_v22, 4 }
 0x2eb   : > { %v1238_v44 = vrot.slane %v1237_v43, 4 }
 0x2ec   : > { %v1288_v0 = vadd.f32 %v1287_v61, %v1286_v56  ;;  %v1259_v29 = vadd.f32 %v1258_v25, %v1257_v22 }
 0x2ed   : > { %v1239_v45 = vmax.f32 %v1237_v43, %v1238_v44 }
 0x2ee   : > { %v1289_v7 = vrot.slane %v1288_v0, 2  ;;  %v1260_v31 = vrot.slane %v1259_v29, 2 }
 0x2ef   : > { %v1240_v46 = vrot.slane %v1239_v45, 2 }
 0x2f0   : > { %v1290_v11 = vadd.f32 %v1289_v7, %v1288_v0  ;;  %v1261_v35 = vadd.f32 %v1260_v31, %v1259_v29  ;;  %v4143_v29 = vmov 2  }
 0x2f1   : > { %v1241_v47 = vmax.f32 %v1239_v45, %v1240_v46 }
 0x2f2   : > { %v1291_v14 = vrot.slane %v1290_v11, 1  ;;  %v1262_v39 = vrot.slane %v1261_v35, 1 }
 0x2f3   : > { %v1242_v48 = vrot.slane %v1241_v47, 1 }
 0x2f4   : > { %v1292_v17 = vadd.f32 %v1291_v14, %v1290_v11  ;;  %v1263_v43 = vadd.f32 %v1262_v39, %v1261_v35 }
 0x2f5   : > { %v1243_v51 = vmax.f32 %v1241_v47, %v1242_v48 }
 0x2f7   : > { %vm1244_vm6 = vcmp.eq.f32.partialorder %v1234_v42, %v1243_v51 }
 0x2f8   : > { %v1245_v52 = vsel %vm1244_vm6, %v4342_v49, 8.0 }
 0x2f9   : > { %v1246_v54 = vsel %vm1236_vm5, %v1245_v52, inf }
 0x2fa   : > { %v1247_v55 = vrot.slane %v1246_v54, 4 }
 0x2fc   : > { %v1248_v57 = vmin.f32 %v1246_v54, %v1247_v55 }
 0x2fe   : > { %v1249_v60 = vrot.slane %v1248_v57, 2 }
 0x300   : > { %v1250_v62 = vmin.f32 %v1248_v57, %v1249_v60 }
 0x302   : > { %v1251_v63 = vrot.slane %v1250_v62, 1 }
 0x304   : > { %v1252_v1 = vmin.f32 %v1250_v62, %v1251_v63 }
 0x306   : > { %vm1253_vm7 = vcmp.eq.f32.partialorder %v4342_v49, %v1252_v1 }
 0x307   : > { %v1264_v4 = vsel %vm1253_vm7, 1, %v4141_v3  ;;  %v1277_v6 = vsel %vm1253_vm7, %v4337_v41, 0.0  ;;  %v1302_v18 = vsel %vm1253_vm7, %v1292_v17, %v4337_v41 }
 0x308   : > { %v1278_v8 = vsel %vm1236_vm5, %v1277_v6, 0.0  ;;  %1266 = vperm.xlu0 %4030, %v1264_v4   ;;  %v1303_v19 = vsel %vm1225_vm4, 0.0, %v1302_v18 }
 0x309   : > { %v1279_v9 = vrot.slane %v1278_v8, 4 }
 0x30b   : > { %v1280_v10 = vadd.f32 %v1279_v9, %v1278_v8 }
 0x30d   : > { %v1281_v12 = vrot.slane %v1280_v10, 2 }
 0x30f   : > { %v1282_v13 = vadd.f32 %v1281_v12, %v1280_v10 }
 0x311   : > { %v1283_v15 = vrot.slane %v1282_v13, 1 }
 0x313   : > { %v1284_v16 = vadd.f32 %v1283_v15, %v1282_v13 }
 0x315   : > { %1296 = vperm.xlu0 %4030, %v1284_v16  }
 0x319   : > { %1306 = vperm.xlu0 %4030, %v1303_v19  }
 0x31d   : > { %4031 = vset.pattern.permute.xlu0 %v4142_v20 }
 0x387   : > { %v1267_v21 = vpop.permute.xlu0 %1266 }
 0x388   : > { %vm1268_vm8 = vcmp.eq.s32.totalorder %v1267_v21, 1 }
 0x389   : > { %v1269_v23 = vsel %vm1268_vm8, %v4337_v41, 0.0  ;;  %v1293_v45 = vsel %vm1268_vm8, %v1263_v43, %v4337_v41 }
 0x38a   : > { %v1270_v24 = vsel %vm241_vm1, %v1269_v23, 0.0 }
 0x38b   : > { %v1271_v27 = vrot.slane %v1270_v24, 4 }
 0x38d   : > { %v1272_v28 = vadd.f32 %v1271_v27, %v1270_v24 }
 0x38f   : > { %v1273_v30 = vrot.slane %v1272_v28, 2 }
 0x391   : > { %v1274_v34 = vadd.f32 %v1273_v30, %v1272_v28 }
 0x393   : > { %v1275_v37 = vrot.slane %v1274_v34, 1 }
 0x394   : > { %v1297_v33 = vpop.permute.xlu0 %1296 }
 0x395   : > { %4052 = vrcp.f32 %v1297_v33  ;;  %v1276_v40 = vadd.f32 %v1275_v37, %v1274_v34 }
 0x398   : > { %v1307_v46 = vpop.permute.xlu0 %1306 }
 0x39f   : > { %v4053_v42 = vpop.eup %4052 }
 0x3a0   : > { %v1300_v44 = vmul.f32 %v4053_v42, %v1276_v40 }
 0x3a2   : > { %v1301_v47 = vsel %vm1225_vm4, %v1300_v44, %v1293_v45  ;;  %v1309_v48 = vmul.f32 %v1307_v46, %v1300_v44  ;;  %vm1393_vm4 = vcmask 23568  }
 0x3a4   : > { %v4371_v51 = vsub.f32 %v1301_v47, %v1309_v48 }
 0x3a6   : > { %v1312_v52 = vand.u32 2147483647, %v4371_v51  ;;  %v1335_v41 = vsel %vm1331_vm11, %v4371_v51, 0.0 }
 0x3a7   : > { %v1365_v60 = vsel %vm1314_vm10, %v1335_v41, 0.0  ;;  %v1336_v31 = vsel %vm241_vm1, %v1335_v41, 0.0 }
 0x3a8   : > { %v1313_v53 = vsel %vm1311_vm9, %v1312_v52, -1.0  ;;  %v1366_v62 = vrot.slane %v1365_v60, 4  ;;  %v1337_v35 = vrot.slane %v1336_v31, 4  ;;  %vm1469_vm9 = vcmp.ge.s32.totalorder %v4316_v58, 3 }
 0x3a9   : > { %v1315_v54 = vsel %vm1314_vm10, %v1313_v53, -inf }
 0x3aa   : > { %v1316_v55 = vrot.slane %v1315_v54, 4  ;;  %v1367_v1 = vadd.f32 %v1366_v62, %v1365_v60  ;;  %v1338_v40 = vadd.f32 %v1337_v35, %v1336_v31 }
 0x3ac   : > { %v1317_v56 = vmax.f32 %v1315_v54, %v1316_v55  ;;  %v1368_v8 = vrot.slane %v1367_v1, 2  ;;  %v1339_v43 = vrot.slane %v1338_v40, 2 }
 0x3ae   : > { %v1318_v57 = vrot.slane %v1317_v56, 2  ;;  %v1369_v11 = vadd.f32 %v1368_v8, %v1367_v1  ;;  %v1340_v46 = vadd.f32 %v1339_v43, %v1338_v40  ;;  %v4144_v40 = vmov 3  }
 0x3b0   : > { %v1319_v61 = vmax.f32 %v1317_v56, %v1318_v57  ;;  %v1370_v14 = vrot.slane %v1369_v11, 1  ;;  %v1341_v48 = vrot.slane %v1340_v46, 1 }
 0x3b2   : > { %v1320_v63 = vrot.slane %v1319_v61, 1  ;;  %v1371_v16 = vadd.f32 %v1370_v14, %v1369_v11  ;;  %v1342_v54 = vadd.f32 %v1341_v48, %v1340_v46 }
 0x3b4   : > { %v1321_v0 = vmax.f32 %v1319_v61, %v1320_v63 }
 0x3b6   : > { %vm1322_vm12 = vcmp.eq.f32.partialorder %v1313_v53, %v1321_v0 }
 0x3b7   : > { %v1323_v4 = vsel %vm1322_vm12, %v4342_v49, 8.0 }
 0x3b8   : > { %v1324_v6 = vsel %vm1314_vm10, %v1323_v4, inf }
 0x3b9   : > { %v1325_v7 = vrot.slane %v1324_v6, 4 }
 0x3bb   : > { %v1326_v9 = vmin.f32 %v1324_v6, %v1325_v7 }
 0x3bd   : > { %v1327_v10 = vrot.slane %v1326_v9, 2 }
 0x3bf   : > { %v1328_v12 = vmin.f32 %v1326_v9, %v1327_v10 }
 0x3c1   : > { %v1329_v13 = vrot.slane %v1328_v12, 1 }
 0x3c3   : > { %v1330_v15 = vmin.f32 %v1328_v12, %v1329_v13 }
 0x3c5   : > { %vm1332_vm13 = vcmp.eq.f32.partialorder %v4342_v49, %v1330_v15 }
 0x3c6   : > { %v1343_v17 = vsel %vm1332_vm13, 1, %v4141_v3  ;;  %v1356_v18 = vsel %vm1332_vm13, %v4371_v51, 0.0  ;;  %v1381_v20 = vsel %vm1332_vm13, %v1371_v16, %v4371_v51 }
 0x3c7   : > { %v1357_v19 = vsel %vm1314_vm10, %v1356_v18, 0.0  ;;  %1345 = vperm.xlu0 %4031, %v1343_v17   ;;  %v1382_v22 = vsel %vm1331_vm11, 0.0, %v1381_v20  ;;  %vm1472_vm10 = vcmask 31768  }
 0x3c8   : > { %v1358_v21 = vrot.slane %v1357_v19, 4 }
 0x3ca   : > { %v1359_v23 = vadd.f32 %v1358_v21, %v1357_v19 }
 0x3cb   : > { %1385 = vperm.xlu0 %4031, %v1382_v22  }
 0x3cc   : > { %v1360_v24 = vrot.slane %v1359_v23, 2 }
 0x3ce   : > { %v1361_v25 = vadd.f32 %v1360_v24, %v1359_v23 }
 0x3cf   : > { %4033 = vset.pattern.permute.xlu0 %v4143_v29 }
 0x3d0   : > { %v1362_v27 = vrot.slane %v1361_v25, 1 }
 0x3d2   : > { %v1363_v28 = vadd.f32 %v1362_v27, %v1361_v25 }
 0x3d4   : > { %1375 = vperm.xlu1 %4032, %v1363_v28  }
 0x3d8   : > { %4034 = vset.pattern.permute.xlu1 %v4143_v29 }
 0x446   : > { %v1346_v30 = vpop.permute.xlu0 %1345 }
 0x447   : > { %vm1347_vm14 = vcmp.eq.s32.totalorder %v1346_v30, 1 }
 0x448   : > { %v1348_v33 = vsel %vm1347_vm14, %v4371_v51, 0.0  ;;  %v1372_v41 = vsel %vm1347_vm14, %v1342_v54, %v4371_v51 }
 0x449   : > { %v1349_v34 = vsel %vm241_vm1, %v1348_v33, 0.0 }
 0x44a   : > { %v1350_v37 = vrot.slane %v1349_v34, 4  ;;  %v1386_v56 = vpop.permute.xlu0 %1385 }
 0x44c   : > { %v1351_v39 = vadd.f32 %v1350_v37, %v1349_v34 }
 0x44e   : > { %v1352_v42 = vrot.slane %v1351_v39, 2 }
 0x450   : > { %v1353_v45 = vadd.f32 %v1352_v42, %v1351_v39 }
 0x452   : > { %v1354_v47 = vrot.slane %v1353_v45, 1 }
 0x453   : > { %v1376_v44 = vpop.permute.xlu1 %1375 }
 0x454   : > { %4054 = vrcp.f32 %v1376_v44  ;;  %v1355_v52 = vadd.f32 %v1354_v47, %v1353_v45 }
 0x45e   : > { %v4055_v53 = vpop.eup %4054 }
 0x45f   : > { %v1379_v55 = vmul.f32 %v4055_v53, %v1355_v52 }
 0x461   : > { %v1380_v57 = vsel %vm1331_vm11, %v1379_v55, %v1372_v41  ;;  %v1388_v60 = vmul.f32 %v1386_v56, %v1379_v55  ;;  %vm1489_vm11 = vcmp.eq.s32.totalorder %v4316_v58, 3 }
 0x463   : > { %v4398_v61 = vsub.f32 %v1380_v57, %v1388_v60 }
 0x465   : > { %v1391_v62 = vand.u32 2147483647, %v4398_v61  ;;  %v1414_v51 = vsel %vm1410_vm2, %v4398_v61, 0.0 }
 0x466   : > { %v1444_v6 = vsel %vm1393_vm4, %v1414_v51, 0.0  ;;  %v1415_v43 = vsel %vm241_vm1, %v1414_v51, 0.0 }
 0x467   : > { %v1392_v63 = vsel %vm1390_vm15, %v1391_v62, -1.0  ;;  %v1445_v9 = vrot.slane %v1444_v6, 4  ;;  %v1416_v46 = vrot.slane %v1415_v43, 4  ;;  %vm1548_vm15 = vcmp.ge.s32.totalorder %v4316_v58, 4 }
 0x468   : > { %v1394_v0 = vsel %vm1393_vm4, %v1392_v63, -inf }
 0x469   : > { %v1395_v1 = vrot.slane %v1394_v0, 4  ;;  %v1446_v12 = vadd.f32 %v1445_v9, %v1444_v6  ;;  %v1417_v52 = vadd.f32 %v1416_v46, %v1415_v43 }
 0x46b   : > { %v1396_v4 = vmax.f32 %v1394_v0, %v1395_v1  ;;  %v1447_v15 = vrot.slane %v1446_v12, 2  ;;  %v1418_v54 = vrot.slane %v1417_v52, 2 }
 0x46d   : > { %v1397_v7 = vrot.slane %v1396_v4, 2  ;;  %v1448_v18 = vadd.f32 %v1447_v15, %v1446_v12  ;;  %v1419_v56 = vadd.f32 %v1418_v54, %v1417_v52  ;;  %v4145_v52 = vmov 4  }
 0x46f   : > { %v1398_v8 = vmax.f32 %v1396_v4, %v1397_v7  ;;  %v1449_v21 = vrot.slane %v1448_v18, 1  ;;  %v1420_v60 = vrot.slane %v1419_v56, 1 }
 0x471   : > { %v1399_v10 = vrot.slane %v1398_v8, 1  ;;  %v1450_v24 = vadd.f32 %v1449_v21, %v1448_v18  ;;  %v1421_v0 = vadd.f32 %v1420_v60, %v1419_v56 }
 0x473   : > { %v1400_v11 = vmax.f32 %v1398_v8, %v1399_v10 }
 0x475   : > { %vm1401_vm6 = vcmp.eq.f32.partialorder %v1392_v63, %v1400_v11 }
 0x476   : > { %v1402_v13 = vsel %vm1401_vm6, %v4342_v49, 8.0 }
 0x477   : > { %v1403_v14 = vsel %vm1393_vm4, %v1402_v13, inf }
 0x478   : > { %v1404_v16 = vrot.slane %v1403_v14, 4 }
 0x47a   : > { %v1405_v17 = vmin.f32 %v1403_v14, %v1404_v16 }
 0x47c   : > { %v1406_v19 = vrot.slane %v1405_v17, 2 }
 0x47e   : > { %v1407_v20 = vmin.f32 %v1405_v17, %v1406_v19 }
 0x480   : > { %v1408_v22 = vrot.slane %v1407_v20, 1 }
 0x482   : > { %v1409_v23 = vmin.f32 %v1407_v20, %v1408_v22 }
 0x484   : > { %vm1411_vm7 = vcmp.eq.f32.partialorder %v4342_v49, %v1409_v23 }
 0x485   : > { %v1422_v25 = vsel %vm1411_vm7, 1, %v4141_v3  ;;  %v1435_v27 = vsel %vm1411_vm7, %v4398_v61, 0.0  ;;  %v1460_v28 = vsel %vm1411_vm7, %v1450_v24, %v4398_v61 }
 0x486   : > { %v1436_v29 = vsel %vm1393_vm4, %v1435_v27, 0.0  ;;  %1424 = vperm.xlu0 %4033, %v1422_v25   ;;  %v1461_v30 = vsel %vm1410_vm2, 0.0, %v1460_v28  ;;  %vm1568_vm4 = vcmp.eq.s32.totalorder %v4316_v58, 4 }
 0x487   : > { %v1437_v31 = vrot.slane %v1436_v29, 4  ;;  %1464 = vperm.xlu1 %4034, %v1461_v30  }
 0x489   : > { %v1438_v33 = vadd.f32 %v1437_v31, %v1436_v29 }
 0x48b   : > { %v1439_v34 = vrot.slane %v1438_v33, 2  ;;  %4036 = vset.pattern.permute.xlu1 %v4144_v40 }
 0x48d   : > { %v1440_v35 = vadd.f32 %v1439_v34, %v1438_v33 }
 0x48f   : > { %v1441_v37 = vrot.slane %v1440_v35, 1 }
 0x491   : > { %v1442_v39 = vadd.f32 %v1441_v37, %v1440_v35 }
 0x493   : > { %1454 = vperm.xlu0 %4033, %v1442_v39  }
 0x497   : > { %4035 = vset.pattern.permute.xlu0 %v4144_v40 }
 0x505   : > { %v1425_v42 = vpop.permute.xlu0 %1424 }
 0x506   : > { %vm1426_vm8 = vcmp.eq.s32.totalorder %v1425_v42, 1  ;;  %v1465_v4 = vpop.permute.xlu1 %1464 }
 0x507   : > { %v1427_v44 = vsel %vm1426_vm8, %v4398_v61, 0.0  ;;  %v1451_v51 = vsel %vm1426_vm8, %v1421_v0, %v4398_v61 }
 0x508   : > { %v1428_v45 = vsel %vm241_vm1, %v1427_v44, 0.0 }
 0x509   : > { %v1429_v47 = vrot.slane %v1428_v45, 4 }
 0x50b   : > { %v1430_v48 = vadd.f32 %v1429_v47, %v1428_v45 }
 0x50d   : > { %v1431_v53 = vrot.slane %v1430_v48, 2 }
 0x50f   : > { %v1432_v41 = vadd.f32 %v1431_v53, %v1430_v48 }
 0x511   : > { %v1433_v57 = vrot.slane %v1432_v41, 1 }
 0x512   : > { %v1455_v55 = vpop.permute.xlu0 %1454 }
 0x513   : > { %4056 = vrcp.f32 %v1455_v55  ;;  %v1434_v62 = vadd.f32 %v1433_v57, %v1432_v41 }
 0x51d   : > { %v4057_v63 = vpop.eup %4056 }
 0x51e   : > { %v1458_v1 = vmul.f32 %v4057_v63, %v1434_v62 }
 0x520   : > { %v1459_v6 = vsel %vm1410_vm2, %v1458_v1, %v1451_v51  ;;  %v1467_v7 = vmul.f32 %v1465_v4, %v1458_v1  ;;  %vm1551_vm2 = vcmask 39968  }
 0x522   : > { %v4425_v8 = vsub.f32 %v1459_v6, %v1467_v7 }
 0x524   : > { %v1470_v9 = vand.u32 2147483647, %v4425_v8  ;;  %v1493_v19 = vsel %vm1489_vm11, %v4425_v8, 0.0 }
 0x525   : > { %v1523_v22 = vsel %vm1472_vm10, %v1493_v19, 0.0  ;;  %v1494_v54 = vsel %vm241_vm1, %v1493_v19, 0.0 }
 0x526   : > { %v1471_v10 = vsel %vm1469_vm9, %v1470_v9, -1.0  ;;  %v1524_v24 = vrot.slane %v1523_v22, 4  ;;  %v1495_v56 = vrot.slane %v1494_v54, 4  ;;  %vm1627_vm9 = vcmp.ge.s32.totalorder %v4316_v58, 5 }
 0x527   : > { %v1473_v11 = vsel %vm1472_vm10, %v1471_v10, -inf }
 0x528   : > { %v1474_v12 = vrot.slane %v1473_v11, 4  ;;  %v1525_v28 = vadd.f32 %v1524_v24, %v1523_v22  ;;  %v1496_v62 = vadd.f32 %v1495_v56, %v1494_v54 }
 0x52a   : > { %v1475_v13 = vmax.f32 %v1473_v11, %v1474_v12  ;;  %v1526_v33 = vrot.slane %v1525_v28, 2  ;;  %v1497_v0 = vrot.slane %v1496_v62, 2 }
 0x52c   : > { %v1476_v14 = vrot.slane %v1475_v13, 2  ;;  %v1527_v39 = vadd.f32 %v1526_v33, %v1525_v28  ;;  %v1498_v4 = vadd.f32 %v1497_v0, %v1496_v62  ;;  %v4146_v62 = vmov 5  }
 0x52e   : > { %v1477_v15 = vmax.f32 %v1475_v13, %v1476_v14  ;;  %v1528_v43 = vrot.slane %v1527_v39, 1  ;;  %v1499_v7 = vrot.slane %v1498_v4, 1 }
 0x530   : > { %v1478_v61 = vrot.slane %v1477_v15, 1  ;;  %v1529_v46 = vadd.f32 %v1528_v43, %v1527_v39  ;;  %v1500_v11 = vadd.f32 %v1499_v7, %v1498_v4 }
 0x532   : > { %v1479_v16 = vmax.f32 %v1477_v15, %v1478_v61 }
 0x534   : > { %vm1480_vm12 = vcmp.eq.f32.partialorder %v1471_v10, %v1479_v16 }
 0x535   : > { %v1481_v17 = vsel %vm1480_vm12, %v4342_v49, 8.0 }
 0x536   : > { %v1482_v18 = vsel %vm1472_vm10, %v1481_v17, inf }
 0x537   : > { %v1483_v20 = vrot.slane %v1482_v18, 4 }
 0x539   : > { %v1484_v21 = vmin.f32 %v1482_v18, %v1483_v20 }
 0x53b   : > { %v1485_v23 = vrot.slane %v1484_v21, 2 }
 0x53d   : > { %v1486_v25 = vmin.f32 %v1484_v21, %v1485_v23 }
 0x53f   : > { %v1487_v27 = vrot.slane %v1486_v25, 1 }
 0x541   : > { %v1488_v29 = vmin.f32 %v1486_v25, %v1487_v27 }
 0x543   : > { %vm1490_vm13 = vcmp.eq.f32.partialorder %v4342_v49, %v1488_v29 }
 0x544   : > { %v1501_v30 = vsel %vm1490_vm13, 1, %v4141_v3  ;;  %v1514_v31 = vsel %vm1490_vm13, %v4425_v8, 0.0  ;;  %v1539_v47 = vsel %vm1490_vm13, %v1529_v46, %v4425_v8 }
 0x545   : > { %v1515_v34 = vsel %vm1472_vm10, %v1514_v31, 0.0  ;;  %1503 = vperm.xlu0 %4035, %v1501_v30   ;;  %v1540_v48 = vsel %vm1489_vm11, 0.0, %v1539_v47  ;;  %vm1630_vm10 = vcmask 48168  }
 0x546   : > { %v1516_v35 = vrot.slane %v1515_v34, 4 }
 0x548   : > { %v1517_v37 = vadd.f32 %v1516_v35, %v1515_v34 }
 0x549   : > { %4037 = vset.pattern.permute.xlu0 %v4145_v52 }
 0x54a   : > { %v1518_v40 = vrot.slane %v1517_v37, 2 }
 0x54c   : > { %v1519_v42 = vadd.f32 %v1518_v40, %v1517_v37 }
 0x54e   : > { %v1520_v44 = vrot.slane %v1519_v42, 1 }
 0x550   : > { %v1521_v45 = vadd.f32 %v1520_v44, %v1519_v42 }
 0x552   : > { %1533 = vperm.xlu1 %4036, %v1521_v45  }
 0x556   : > { %1543 = vperm.xlu1 %4036, %v1540_v48  }
 0x55a   : > { %4038 = vset.pattern.permute.xlu1 %v4145_v52 }
 0x5c4   : > { %v1504_v53 = vpop.permute.xlu0 %1503 }
 0x5c5   : > { %vm1505_vm14 = vcmp.eq.s32.totalorder %v1504_v53, 1 }
 0x5c6   : > { %v1506_v55 = vsel %vm1505_vm14, %v4425_v8, 0.0  ;;  %v1530_v13 = vsel %vm1505_vm14, %v1500_v11, %v4425_v8 }
 0x5c7   : > { %v1507_v41 = vsel %vm241_vm1, %v1506_v55, 0.0 }
 0x5c8   : > { %v1508_v57 = vrot.slane %v1507_v41, 4 }
 0x5ca   : > { %v1509_v60 = vadd.f32 %v1508_v57, %v1507_v41 }
 0x5cc   : > { %v1510_v63 = vrot.slane %v1509_v60, 2 }
 0x5ce   : > { %v1511_v51 = vadd.f32 %v1510_v63, %v1509_v60 }
 0x5d0   : > { %v1512_v6 = vrot.slane %v1511_v51, 1 }
 0x5d1   : > { %v1534_v1 = vpop.permute.xlu1 %1533 }
 0x5d2   : > { %4058 = vrcp.f32 %v1534_v1  ;;  %v1513_v9 = vadd.f32 %v1512_v6, %v1511_v51 }
 0x5d5   : > { %v1544_v14 = vpop.permute.xlu1 %1543 }
 0x5dc   : > { %v4059_v10 = vpop.eup %4058 }
 0x5dd   : > { %v1537_v12 = vmul.f32 %v4059_v10, %v1513_v9 }
 0x5df   : > { %v1538_v15 = vsel %vm1489_vm11, %v1537_v12, %v1530_v13  ;;  %v1546_v61 = vmul.f32 %v1544_v14, %v1537_v12  ;;  %vm1647_vm11 = vcmp.eq.s32.totalorder %v4316_v58, 5 }
 0x5e1   : > { %v4458_v16 = vsub.f32 %v1538_v15, %v1546_v61 }
 0x5e3   : > { %v1549_v17 = vand.u32 2147483647, %v4458_v16  ;;  %v1572_v28 = vsel %vm1568_vm4, %v4458_v16, 0.0 }
 0x5e4   : > { %v1602_v31 = vsel %vm1551_vm2, %v1572_v28, 0.0  ;;  %v1573_v0 = vsel %vm241_vm1, %v1572_v28, 0.0 }
 0x5e5   : > { %v1550_v18 = vsel %vm1548_vm15, %v1549_v17, -1.0  ;;  %v1603_v34 = vrot.slane %v1602_v31, 4  ;;  %v1574_v4 = vrot.slane %v1573_v0, 4  ;;  %vm1706_vm15 = vcmp.ge.s32.totalorder %v4316_v58, 6 }
 0x5e6   : > { %v1552_v19 = vsel %vm1551_vm2, %v1550_v18, -inf }
 0x5e7   : > { %v1553_v20 = vrot.slane %v1552_v19, 4  ;;  %v1604_v39 = vadd.f32 %v1603_v34, %v1602_v31  ;;  %v1575_v9 = vadd.f32 %v1574_v4, %v1573_v0 }
 0x5e9   : > { %v1554_v21 = vmax.f32 %v1552_v19, %v1553_v20  ;;  %v1605_v44 = vrot.slane %v1604_v39, 2  ;;  %v1576_v11 = vrot.slane %v1575_v9, 2 }
 0x5eb   : > { %v1555_v22 = vrot.slane %v1554_v21, 2  ;;  %v1606_v48 = vadd.f32 %v1605_v44, %v1604_v39  ;;  %v1577_v14 = vadd.f32 %v1576_v11, %v1575_v9  ;;  %v4147_v9 = vmov 6  }
 0x5ed   : > { %v1556_v23 = vmax.f32 %v1554_v21, %v1555_v22  ;;  %v1607_v54 = vrot.slane %v1606_v48, 1  ;;  %v1578_v61 = vrot.slane %v1577_v14, 1 }
 0x5ef   : > { %v1557_v8 = vrot.slane %v1556_v23, 1  ;;  %v1608_v56 = vadd.f32 %v1607_v54, %v1606_v48  ;;  %v1579_v19 = vadd.f32 %v1578_v61, %v1577_v14 }
 0x5f1   : > { %v1558_v24 = vmax.f32 %v1556_v23, %v1557_v8 }
 0x5f3   : > { %vm1559_vm6 = vcmp.eq.f32.partialorder %v1550_v18, %v1558_v24 }
 0x5f4   : > { %v1560_v25 = vsel %vm1559_vm6, %v4342_v49, 8.0 }
 0x5f5   : > { %v1561_v27 = vsel %vm1551_vm2, %v1560_v25, inf }
 0x5f6   : > { %v1562_v29 = vrot.slane %v1561_v27, 4 }
 0x5f8   : > { %v1563_v30 = vmin.f32 %v1561_v27, %v1562_v29 }
 0x5fa   : > { %v1564_v33 = vrot.slane %v1563_v30, 2 }
 0x5fc   : > { %v1565_v35 = vmin.f32 %v1563_v30, %v1564_v33 }
 0x5fe   : > { %v1566_v37 = vrot.slane %v1565_v35, 1 }
 0x600   : > { %v1567_v40 = vmin.f32 %v1565_v35, %v1566_v37 }
 0x602   : > { %vm1569_vm7 = vcmp.eq.f32.partialorder %v4342_v49, %v1567_v40 }
 0x603   : > { %v1580_v42 = vsel %vm1569_vm7, 1, %v4141_v3  ;;  %v1593_v43 = vsel %vm1569_vm7, %v4458_v16, 0.0  ;;  %v1618_v57 = vsel %vm1569_vm7, %v1608_v56, %v4458_v16 }
 0x604   : > { %v1594_v45 = vsel %vm1551_vm2, %v1593_v43, 0.0  ;;  %1582 = vperm.xlu0 %4037, %v1580_v42   ;;  %v1619_v60 = vsel %vm1568_vm4, 0.0, %v1618_v57  ;;  %vm1709_vm2 = vcmask 56368  }
 0x605   : > { %v1595_v46 = vrot.slane %v1594_v45, 4 }
 0x607   : > { %v1596_v47 = vadd.f32 %v1595_v46, %v1594_v45 }
 0x608   : > { %4039 = vset.pattern.permute.xlu0 %v4146_v62 }
 0x609   : > { %v1597_v52 = vrot.slane %v1596_v47, 2 }
 0x60b   : > { %v1598_v53 = vadd.f32 %v1597_v52, %v1596_v47 }
 0x60d   : > { %v1599_v55 = vrot.slane %v1598_v53, 1 }
 0x60f   : > { %v1600_v41 = vadd.f32 %v1599_v55, %v1598_v53 }
 0x611   : > { %1612 = vperm.xlu1 %4038, %v1600_v41  }
 0x615   : > { %1622 = vperm.xlu1 %4038, %v1619_v60  }
 0x619   : > { %4040 = vset.pattern.permute.xlu1 %v4146_v62 }
 0x683   : > { %v1583_v63 = vpop.permute.xlu0 %1582 }
 0x684   : > { %vm1584_vm8 = vcmp.eq.s32.totalorder %v1583_v63, 1 }
 0x685   : > { %v1585_v1 = vsel %vm1584_vm8, %v4458_v16, 0.0  ;;  %v1609_v21 = vsel %vm1584_vm8, %v1579_v19, %v4458_v16 }
 0x686   : > { %v1586_v51 = vsel %vm241_vm1, %v1585_v1, 0.0 }
 0x687   : > { %v1587_v6 = vrot.slane %v1586_v51, 4 }
 0x689   : > { %v1588_v7 = vadd.f32 %v1587_v6, %v1586_v51 }
 0x68b   : > { %v1589_v10 = vrot.slane %v1588_v7, 2 }
 0x68d   : > { %v1590_v13 = vadd.f32 %v1589_v10, %v1588_v7 }
 0x68f   : > { %v1591_v15 = vrot.slane %v1590_v13, 1 }
 0x690   : > { %v1613_v12 = vpop.permute.xlu1 %1612 }
 0x691   : > { %4060 = vrcp.f32 %v1613_v12  ;;  %v1592_v17 = vadd.f32 %v1591_v15, %v1590_v13 }
 0x694   : > { %v1623_v22 = vpop.permute.xlu1 %1622 }
 0x69b   : > { %v4061_v18 = vpop.eup %4060 }
 0x69c   : > { %v1616_v20 = vmul.f32 %v4061_v18, %v1592_v17 }
 0x69e   : > { %v1617_v23 = vsel %vm1568_vm4, %v1616_v20, %v1609_v21  ;;  %v1625_v8 = vmul.f32 %v1623_v22, %v1616_v20  ;;  %vm1726_vm4 = vcmp.eq.s32.totalorder %v4316_v58, 6 }
 0x6a0   : > { %v4491_v24 = vsub.f32 %v1617_v23, %v1625_v8 }
 0x6a2   : > { %v1628_v25 = vand.u32 2147483647, %v4491_v24  ;;  %v1651_v39 = vsel %vm1647_vm11, %v4491_v24, 0.0 }
 0x6a3   : > { %v1681_v43 = vsel %vm1630_vm10, %v1651_v39, 0.0  ;;  %v1652_v11 = vsel %vm241_vm1, %v1651_v39, 0.0 }
 0x6a4   : > { %v1629_v27 = vsel %vm1627_vm9, %v1628_v25, -1.0  ;;  %v1682_v45 = vrot.slane %v1681_v43, 4  ;;  %v1653_v14 = vrot.slane %v1652_v11, 4  ;;  %vm1785_vm9 = vcmp.ge.s32.totalorder %v4316_v58, 7 }
 0x6a5   : > { %v1631_v28 = vsel %vm1630_vm10, %v1629_v27, -inf }
 0x6a6   : > { %v1632_v29 = vrot.slane %v1631_v28, 4  ;;  %v1683_v48 = vadd.f32 %v1682_v45, %v1681_v43  ;;  %v1654_v17 = vadd.f32 %v1653_v14, %v1652_v11 }
 0x6a8   : > { %v1633_v30 = vmax.f32 %v1631_v28, %v1632_v29  ;;  %v1684_v55 = vrot.slane %v1683_v48, 2  ;;  %v1655_v19 = vrot.slane %v1654_v17, 2 }
 0x6aa   : > { %v1634_v31 = vrot.slane %v1633_v30, 2  ;;  %v1685_v60 = vadd.f32 %v1684_v55, %v1683_v48  ;;  %v1656_v22 = vadd.f32 %v1655_v19, %v1654_v17  ;;  %v4148_v17 = vmov 7  }
 0x6ac   : > { %v1635_v33 = vmax.f32 %v1633_v30, %v1634_v31  ;;  %v1686_v0 = vrot.slane %v1685_v60, 1  ;;  %v1657_v8 = vrot.slane %v1656_v22, 1 }
 0x6ae   : > { %v1636_v16 = vrot.slane %v1635_v33, 1  ;;  %v1687_v4 = vadd.f32 %v1686_v0, %v1685_v60  ;;  %v1658_v28 = vadd.f32 %v1657_v8, %v1656_v22 }
 0x6b0   : > { %v1637_v34 = vmax.f32 %v1635_v33, %v1636_v16 }
 0x6b2   : > { %vm1638_vm12 = vcmp.eq.f32.partialorder %v1629_v27, %v1637_v34 }
 0x6b3   : > { %v1639_v35 = vsel %vm1638_vm12, %v4342_v49, 8.0 }
 0x6b4   : > { %v1640_v37 = vsel %vm1630_vm10, %v1639_v35, inf }
 0x6b5   : > { %v1641_v40 = vrot.slane %v1640_v37, 4 }
 0x6b7   : > { %v1642_v42 = vmin.f32 %v1640_v37, %v1641_v40 }
 0x6b9   : > { %v1643_v44 = vrot.slane %v1642_v42, 2 }
 0x6bb   : > { %v1644_v46 = vmin.f32 %v1642_v42, %v1643_v44 }
 0x6bd   : > { %v1645_v47 = vrot.slane %v1644_v46, 1 }
 0x6bf   : > { %v1646_v52 = vmin.f32 %v1644_v46, %v1645_v47 }
 0x6c1   : > { %vm1648_vm13 = vcmp.eq.f32.partialorder %v4342_v49, %v1646_v52 }
 0x6c2   : > { %v1659_v53 = vsel %vm1648_vm13, 1, %v4141_v3  ;;  %v1672_v54 = vsel %vm1648_vm13, %v4491_v24, 0.0  ;;  %v1697_v6 = vsel %vm1648_vm13, %v1687_v4, %v4491_v24 }
 0x6c3   : > { %v1673_v41 = vsel %vm1630_vm10, %v1672_v54, 0.0  ;;  %1661 = vperm.xlu0 %4039, %v1659_v53   ;;  %v1698_v7 = vsel %vm1647_vm11, 0.0, %v1697_v6  ;;  %vm1788_vm10 = vcmask 64568  }
 0x6c4   : > { %v1674_v56 = vrot.slane %v1673_v41, 4 }
 0x6c6   : > { %v1675_v57 = vadd.f32 %v1674_v56, %v1673_v41 }
 0x6c7   : > { %4041 = vset.pattern.permute.xlu0 %v4147_v9 }
 0x6c8   : > { %v1676_v62 = vrot.slane %v1675_v57, 2 }
 0x6ca   : > { %v1677_v63 = vadd.f32 %v1676_v62, %v1675_v57 }
 0x6cc   : > { %v1678_v1 = vrot.slane %v1677_v63, 1 }
 0x6ce   : > { %v1679_v51 = vadd.f32 %v1678_v1, %v1677_v63 }
 0x6d0   : > { %1691 = vperm.xlu1 %4040, %v1679_v51  }
 0x6d4   : > { %1701 = vperm.xlu1 %4040, %v1698_v7  }
 0x6d8   : > { %4042 = vset.pattern.permute.xlu1 %v4147_v9 }
 0x742   : > { %v1662_v10 = vpop.permute.xlu0 %1661 }
 0x743   : > { %vm1663_vm14 = vcmp.eq.s32.totalorder %v1662_v10, 1 }
 0x744   : > { %v1664_v12 = vsel %vm1663_vm14, %v4491_v24, 0.0  ;;  %v1688_v30 = vsel %vm1663_vm14, %v1658_v28, %v4491_v24 }
 0x745   : > { %v1665_v13 = vsel %vm241_vm1, %v1664_v12, 0.0 }
 0x746   : > { %v1666_v15 = vrot.slane %v1665_v13, 4 }
 0x748   : > { %v1667_v61 = vadd.f32 %v1666_v15, %v1665_v13 }
 0x74a   : > { %v1668_v18 = vrot.slane %v1667_v61, 2 }
 0x74c   : > { %v1669_v21 = vadd.f32 %v1668_v18, %v1667_v61 }
 0x74e   : > { %v1670_v23 = vrot.slane %v1669_v21, 1 }
 0x74f   : > { %v1692_v20 = vpop.permute.xlu1 %1691 }
 0x750   : > { %4062 = vrcp.f32 %v1692_v20  ;;  %v1671_v25 = vadd.f32 %v1670_v23, %v1669_v21 }
 0x753   : > { %v1702_v31 = vpop.permute.xlu1 %1701 }
 0x75a   : > { %v4063_v27 = vpop.eup %4062 }
 0x75b   : > { %v1695_v29 = vmul.f32 %v4063_v27, %v1671_v25 }
 0x75d   : > { %v1696_v33 = vsel %vm1647_vm11, %v1695_v29, %v1688_v30  ;;  %v1704_v16 = vmul.f32 %v1702_v31, %v1695_v29  ;;  %vm1805_vm11 = vcmp.eq.s32.totalorder %v4316_v58, 7 }
 0x75f   : > { %v4524_v34 = vsub.f32 %v1696_v33, %v1704_v16 }
 0x761   : > { %v1707_v35 = vand.u32 2147483647, %v4524_v34  ;;  %v1730_v48 = vsel %vm1726_vm4, %v4524_v34, 0.0 }
 0x762   : > { %v1760_v54 = vsel %vm1709_vm2, %v1730_v48, 0.0  ;;  %v1731_v19 = vsel %vm241_vm1, %v1730_v48, 0.0 }
 0x763   : > { %v1708_v37 = vsel %vm1706_vm15, %v1707_v35, -1.0  ;;  %v1761_v41 = vrot.slane %v1760_v54, 4  ;;  %v1732_v22 = vrot.slane %v1731_v19, 4  ;;  %vm1889_vm15 = vcmp.ne.s32.totalorder %v4318_v59, 0 }
 0x764   : > { %v1710_v39 = vsel %vm1709_vm2, %v1708_v37, -inf }
 0x765   : > { %v1711_v40 = vrot.slane %v1710_v39, 4  ;;  %v1762_v60 = vadd.f32 %v1761_v41, %v1760_v54  ;;  %v1733_v25 = vadd.f32 %v1732_v22, %v1731_v19 }
 0x767   : > { %v1712_v42 = vmax.f32 %v1710_v39, %v1711_v40  ;;  %v1763_v1 = vrot.slane %v1762_v60, 2  ;;  %v1734_v28 = vrot.slane %v1733_v25, 2 }
 0x769   : > { %v1713_v43 = vrot.slane %v1712_v42, 2  ;;  %v1764_v7 = vadd.f32 %v1763_v1, %v1762_v60  ;;  %v1735_v31 = vadd.f32 %v1734_v28, %v1733_v25 }
 0x76b   : > { %v1714_v44 = vmax.f32 %v1712_v42, %v1713_v43  ;;  %v1765_v11 = vrot.slane %v1764_v7, 1  ;;  %v1736_v16 = vrot.slane %v1735_v31, 1 }
 0x76d   : > { %v1715_v24 = vrot.slane %v1714_v44, 1  ;;  %v1766_v14 = vadd.f32 %v1765_v11, %v1764_v7  ;;  %v1737_v39 = vadd.f32 %v1736_v16, %v1735_v31 }
 0x76f   : > { %v1716_v45 = vmax.f32 %v1714_v44, %v1715_v24 }
 0x771   : > { %vm1717_vm6 = vcmp.eq.f32.partialorder %v1708_v37, %v1716_v45 }
 0x772   : > { %v1718_v46 = vsel %vm1717_vm6, %v4342_v49, 8.0 }
 0x773   : > { %v1719_v47 = vsel %vm1709_vm2, %v1718_v46, inf }
 0x774   : > { %v1720_v52 = vrot.slane %v1719_v47, 4 }
 0x776   : > { %v1721_v53 = vmin.f32 %v1719_v47, %v1720_v52 }
 0x778   : > { %v1722_v55 = vrot.slane %v1721_v53, 2 }
 0x77a   : > { %v1723_v56 = vmin.f32 %v1721_v53, %v1722_v55 }
 0x77c   : > { %v1724_v57 = vrot.slane %v1723_v56, 1 }
 0x77e   : > { %v1725_v62 = vmin.f32 %v1723_v56, %v1724_v57 }
 0x780   : > { %vm1727_vm7 = vcmp.eq.f32.partialorder %v4342_v49, %v1725_v62 }
 0x781   : > { %v1738_v63 = vsel %vm1727_vm7, 1, %v4141_v3  ;;  %v1751_v0 = vsel %vm1727_vm7, %v4524_v34, 0.0  ;;  %v1776_v15 = vsel %vm1727_vm7, %v1766_v14, %v4524_v34 }
 0x782   : > { %v1752_v51 = vsel %vm1709_vm2, %v1751_v0, 0.0  ;;  %1740 = vperm.xlu0 %4041, %v1738_v63   ;;  %v1777_v61 = vsel %vm1726_vm4, 0.0, %v1776_v15  ;;  %vm1886_vm2 = vcmp.ne.s32.totalorder %v4316_v58, 0 }
 0x783   : > { %v1753_v4 = vrot.slane %v1752_v51, 4 }
 0x785   : > { %v1754_v6 = vadd.f32 %v1753_v4, %v1752_v51 }
 0x786   : > { %4043 = vset.pattern.permute.xlu0 %v4148_v17 }
 0x787   : > { %v1755_v9 = vrot.slane %v1754_v6, 2 }
 0x789   : > { %v1756_v10 = vadd.f32 %v1755_v9, %v1754_v6 }
 0x78b   : > { %v1757_v12 = vrot.slane %v1756_v10, 1 }
 0x78d   : > { %v1758_v13 = vadd.f32 %v1757_v12, %v1756_v10 }
 0x78f   : > { %1770 = vperm.xlu1 %4042, %v1758_v13  }
 0x793   : > { %1780 = vperm.xlu1 %4042, %v1777_v61  }
 0x797   : > { %4044 = vset.pattern.permute.xlu1 %v4148_v17 }
 0x801   : > { %v1741_v18 = vpop.permute.xlu0 %1740 }
 0x802   : > { %vm1742_vm8 = vcmp.eq.s32.totalorder %v1741_v18, 1 }
 0x803   : > { %v1743_v20 = vsel %vm1742_vm8, %v4524_v34, 0.0  ;;  %v1767_v42 = vsel %vm1742_vm8, %v1737_v39, %v4524_v34 }
 0x804   : > { %v1744_v21 = vsel %vm241_vm1, %v1743_v20, 0.0 }
 0x805   : > { %v1745_v23 = vrot.slane %v1744_v21, 4 }
 0x807   : > { %v1746_v8 = vadd.f32 %v1745_v23, %v1744_v21 }
 0x809   : > { %v1747_v27 = vrot.slane %v1746_v8, 2 }
 0x80b   : > { %v1748_v30 = vadd.f32 %v1747_v27, %v1746_v8 }
 0x80d   : > { %v1749_v33 = vrot.slane %v1748_v30, 1 }
 0x80e   : > { %v1771_v29 = vpop.permute.xlu1 %1770 }
 0x80f   : > { %4064 = vrcp.f32 %v1771_v29  ;;  %v1750_v35 = vadd.f32 %v1749_v33, %v1748_v30 }
 0x812   : > { %v1781_v43 = vpop.permute.xlu1 %1780 }
 0x819   : > { %v4065_v37 = vpop.eup %4064 }
 0x81a   : > { %v1774_v40 = vmul.f32 %v4065_v37, %v1750_v35 }
 0x81c   : > { %v1775_v44 = vsel %vm1726_vm4, %v1774_v40, %v1767_v42  ;;  %v1783_v24 = vmul.f32 %v1781_v43, %v1774_v40  ;;  %vm2862_vm4 = vcmask 392192  }
 0x81e   : > { %v4557_v45 = vsub.f32 %v1775_v44, %v1783_v24 }
 0x820   : > { %v1786_v46 = vand.u32 2147483647, %v4557_v45  ;;  %v1809_v60 = vsel %vm1805_vm11, %v4557_v45, 0.0 }
 0x821   : > { %v1839_v0 = vsel %vm1788_vm10, %v1809_v60, 0.0  ;;  %v1810_v25 = vsel %vm241_vm1, %v1809_v60, 0.0 }
 0x822   : > { %v1787_v47 = vsel %vm1785_vm9, %v1786_v46, -1.0  ;;  %v1840_v51 = vrot.slane %v1839_v0, 4  ;;  %v1811_v29 = vrot.slane %v1810_v25, 4 }
 0x823   : > { %v1789_v48 = vsel %vm1788_vm10, %v1787_v47, -inf }
 0x824   : > { %v1790_v52 = vrot.slane %v1789_v48, 4  ;;  %v1841_v7 = vadd.f32 %v1840_v51, %v1839_v0  ;;  %v1812_v33 = vadd.f32 %v1811_v29, %v1810_v25  ;;  %v2855_v29 = vld [vmem:[%s4805_s3 + $0x10] sm:$0xff] }
 0x826   : > { %v1791_v53 = vmax.f32 %v1789_v48, %v1790_v52  ;;  %v1842_v12 = vrot.slane %v1841_v7, 2 }
 0x828   : > { %v1792_v54 = vrot.slane %v1791_v53, 2  ;;  %v1843_v61 = vadd.f32 %v1842_v12, %v1841_v7 }
 0x82a   : > { %v1793_v55 = vmax.f32 %v1791_v53, %v1792_v54  ;;  %v1844_v19 = vrot.slane %v1843_v61, 1 }
 0x82c   : > { %v1794_v34 = vrot.slane %v1793_v55, 1  ;;  %v1845_v22 = vadd.f32 %v1844_v19, %v1843_v61 }
 0x82e   : > { %v1795_v41 = vmax.f32 %v1793_v55, %v1794_v34 }
 0x830   : > { %vm1796_vm12 = vcmp.eq.f32.partialorder %v1787_v47, %v1795_v41 }
 0x831   : > { %v1797_v56 = vsel %vm1796_vm12, %v4342_v49, 8.0 }
 0x832   : > { %v1798_v57 = vsel %vm1788_vm10, %v1797_v56, inf }
 0x833   : > { %v1799_v62 = vrot.slane %v1798_v57, 4 }
 0x835   : > { %v1800_v63 = vmin.f32 %v1798_v57, %v1799_v62  ;;  %v3488_v57 = vsel %vm1889_vm15, 1.0, %v4136_v5 }
 0x837   : > { %v1801_v1 = vrot.slane %v1800_v63, 2 }
 0x839   : > { %v1802_v4 = vmin.f32 %v1800_v63, %v1801_v1  ;;  %v4599_v63 = vld [vmem:[%s4275_s17] sm:$0xff]  ;;  %s4759_s17 = scalar_lea.hbm %s4807_s5, %s3490_s12 }
 0x83a   : > { %v2020_v0 = vsub.f32 %v4599_v63, %v4281_v26 }
 0x83b   : > { %v1803_v6 = vrot.slane %v1802_v4, 1 }
 0x83c   : > { %v2021_v59 = vand.u32 4294901760, %v2020_v0 }
 0x83d   : > { %v1804_v9 = vmin.f32 %v1802_v4, %v1803_v6 }
 0x83f   : > { %vm1806_vm13 = vcmp.eq.f32.partialorder %v4342_v49, %v1804_v9  ;;  %v1813_v49 = vrot.slane %v1812_v33, 2  ;;  %v2022_v9 = vsub.f32 %v2020_v0, %v2021_v59 }
 0x840   : > { %v1817_v10 = vsel %vm1806_vm13, 1, %v4141_v3  ;;  %v1830_v11 = vsel %vm1806_vm13, %v4557_v45, 0.0  ;;  %v1855_v3 = vsel %vm1806_vm13, %v1845_v22, %v4557_v45  ;;  %v2853_v22 = vld [vmem:[%s4805_s3] sm:$0xff] }
 0x841   : > { %v1831_v13 = vsel %vm1788_vm10, %v1830_v11, 0.0  ;;  %1819 = vperm.xlu0 %4043, %v1817_v10   ;;  %v1856_v23 = vsel %vm1805_vm11, 0.0, %v1855_v3  ;;  %v1814_v39 = vadd.f32 %v1813_v49, %v1812_v33  ;;  %v2023_v11 = vand.u32 4294901760, %v2022_v9 }
 0x842   : > { %v1832_v14 = vrot.slane %v1831_v13, 4  ;;  %v2867_v3 = vand.u32 4294901760, %v2853_v22 }
 0x843   : > { %v1815_v42 = vrot.slane %v1814_v39, 1 }
 0x844   : > { %v1833_v15 = vadd.f32 %v1832_v14, %v1831_v13  ;;  %v4661_v25 = vsub.f32 %v2853_v22, %v2867_v3 }
 0x845   : > { %v1816_v24 = vadd.f32 %v1815_v42, %v1814_v39  ;;  %v2858_v42 = vld [vmem:[%s4805_s3 + $0x28] sm:$0xff] }
 0x846   : > { %v1834_v17 = vrot.slane %v1833_v15, 2 }
 0x848   : > { %v1835_v18 = vadd.f32 %v1834_v17, %v1833_v15 }
 0x84a   : > { %v1836_v20 = vrot.slane %v1835_v18, 1 }
 0x84c   : > { %v1837_v21 = vadd.f32 %v1836_v20, %v1835_v18 }
 0x84e   : > { %1849 = vperm.xlu1 %4044, %v1837_v21  }
 0x852   : > { %1859 = vperm.xlu1 %4044, %v1856_v23  }
 0x8c0   : > { %v1820_v8 = vpop.permute.xlu0 %1819 }
 0x8c1   : > { %vm1821_vm14 = vcmp.eq.s32.totalorder %v1820_v8, 1 }
 0x8c2   : > { %v1822_v27 = vsel %vm1821_vm14, %v4557_v45, 0.0  ;;  %v1846_v47 = vsel %vm1821_vm14, %v1816_v24, %v4557_v45 }
 0x8c3   : > { %v1823_v28 = vsel %vm241_vm1, %v1822_v27, 0.0 }
 0x8c4   : > { %v1824_v30 = vrot.slane %v1823_v28, 4 }
 0x8c6   : > { %v1825_v31 = vadd.f32 %v1824_v30, %v1823_v28  ;;  %v2856_v30 = vld [vmem:[%s4805_s3 + $0x18] sm:$0xff] }
 0x8c7   : > { %v2876_v49 = vand.u32 4294901760, %v2856_v30 }
 0x8c8   : > { %v1826_v16 = vrot.slane %v1825_v31, 2 }
 0x8ca   : > { %v1827_v37 = vadd.f32 %v1826_v16, %v1825_v31  ;;  %v4069_v31 = vld [vmem:[%s4806_s4] ss:$0 sm:$0xff]  ;;  %v2873_v16 = vand.u32 4294901760, %v2855_v29 }
 0x8cc   : > { %v1828_v40 = vrot.slane %v1827_v37, 1  ;;  %v4678_v39 = vpack.c.bf16 %v2876_v49, %v2873_v16 }
 0x8cd   : > { %v1850_v35 = vpop.permute.xlu1 %1849 }
 0x8ce   : > { %4066 = vrcp.f32 %v1850_v35  ;;  %v1829_v43 = vadd.f32 %v1828_v40, %v1827_v37  ;;  %v2857_v40 = vld [vmem:[%s4805_s3 + $0x20] sm:$0xff] }
 0x8d1   : > { %v1860_v48 = vpop.permute.xlu1 %1859 }
 0x8d8   : > { %v4067_v44 = vpop.eup %4066 }
 0x8d9   : > { %v1853_v46 = vmul.f32 %v4067_v44, %v1829_v43  ;;  %v2879_v43 = vand.u32 4294901760, %v2857_v40  ;;  %v2882_v44 = vand.u32 4294901760, %v2858_v42 }
 0x8db   : > { %v1854_v52 = vsel %vm1805_vm11, %v1853_v46, %v1846_v47  ;;  %v1862_v53 = vmul.f32 %v1860_v48, %v1853_v46  ;;  %v4690_v24 = vpack.c.bf16 %v2882_v44, %v2879_v43  ;;  %v4693_v46 = vsub.f32 %v2855_v29, %v2873_v16 }
 0x8dc   : > { %v4695_v47 = vsub.f32 %v2856_v30, %v2876_v49  ;;  %v4697_v48 = vsub.f32 %v2857_v40, %v2879_v43 }
 0x8dd   : > { %v1863_v54 = vsub.f32 %v1854_v52, %v1862_v53  ;;  %v4699_v52 = vsub.f32 %v2858_v42, %v2882_v44  ;;  %v2950_v53 = vand.u32 4294901760, %v4661_v25 }
 0x8df   : > { %v1869_v55 = vmul.f32 %v1863_v54, %v4331_v38  ;;  %v3487_v38 = vsel %vm1886_vm2, 1.0, %v4136_v5  ;;  %v2985_v9 = vand.u32 4294901760, %v4699_v52 }
 0x8e1   : > { %1871 = vrot.lane.b32.xlu0 %v1869_v55, %s4149_s6 }
 0x8e5   : > { %1894 = vrot.lane.b32.xlu0 %v1863_v54, %s4149_s6  ;;  %s4076_s6 = scalar_lea.vmem %s4075_s30, 256 }
 0x953   : > { %v1872_v34 = vpop.permute.xlu0 %1871 }
 0x954   : > { %v1874_v41 = vsel %vm1202_vm3, %v1872_v34, 0.0  ;;  %v2951_v34 = vsub.f32 %v4661_v25, %v2950_v53 }
 0x955   : > { %1875 = vadd.xlane.f32.xlu1 %v1874_v41 }
 0x957   : > { %v1895_v56 = vpop.permute.xlu0 %1894 }
 0x958   : > { %v1897_v45 = vmul.f32 %v1895_v56, %v4328_v36  ;;  %v2952_v56 = vand.u32 4294901760, %v2951_v34 }
 0x95a   : > { %v1898_v1 = vmul.f32 %v3488_v57, %v1897_v45  ;;  %v2964_v57 = vand.u32 4294901760, %v4693_v46 }
 0x966   : > { %1865 = vrot.lane.b32.xlu1 %v1863_v54, %s4150_s7 }
 0x9e2   : > { %v1876_v60 = vpop.xlane.xlu1 %1875 }
 0x9e3   : > { %v1892_v62 = vmul.f32 %v4328_v36, %v1876_v60 }
 0x9e5   : > { %v1893_v51 = vmul.f32 %v3487_v38, %v1892_v62  ;;  %v2971_v38 = vand.u32 4294901760, %v4695_v47 }
 0x9e6   : > { %v1866_v13 = vpop.permute.xlu1 %1865 }
 0x9e7   : > { %v4603_v4 = vsub.f32 %v1893_v51, %v1898_v1  ;;  %v4622_v14 = vmul.f32 %v4292_v50, %v1866_v13  ;;  %v3905_v62 = vpack.c.bf16 %v2971_v38, %v2964_v57  ;;  %v2972_v1 = vsub.f32 %v4695_v47, %v2971_v38 }
 0x9e9   : > { %1900 = vxpose.xlu0.b32.start.end [1/1] (short) (narrow) %v4603_v4, 8  ;;  %v1940_v58 = vsel %vm1202_vm3, %v4603_v4, 0 }
 0x9ea   : > { %v2008_v6 = vand.u32 4294901760, %v1940_v58 }
 0x9ec   : > { %v2009_v7 = vsub.f32 %v1940_v58, %v2008_v6 }
 0x9ee   : > { %v2010_v10 = vand.u32 4294901760, %v2009_v7 }
 0x9f0   : > { %v2011_v36 = vsub.f32 %v2009_v7, %v2010_v10 }
 0x9f2   : > { %v2012_v12 = vand.u32 4294901760, %v2011_v36 }
 0x9f4   : > { %3682 = vmatmul.mubr.f32.vlgmr.msra.gmra.mrb[2].mxu0 %v2012_v12  ;;  %v2986_v12 = vsub.f32 %v4699_v52, %v2985_v9 }
 0x9f5   : > { %3685 = vmatpush3.msra.mxu0 %v2023_v11  ;;  %3686 = vmatprep.mubr.msk.f32.mxu0 %vm4135_vm0, %v4136_v5 }
 0x9f6   : > { %3689 = vmatprep.subr.mxu0 %v4136_v5 }
 0x9fc   : > { %3687 = vmatmul.mubr.f32.vlgmr.msra.gmra.mrb[2].mxu0 %v2008_v6 }
 0x9fd   : > { %3690 = vmatpush3.msra.mxu0 %v2020_v0  ;;  %3691 = vmatprep.mubr.msk.f32.mxu0 %vm4135_vm0, %v4136_v5 }
 0x9fe   : > { %3694 = vmatprep.subr.mxu0 %v4136_v5 }
 0xa04   : > { %3692 = vmatmul.mubr.f32.vlgmr.msra.gmra.mrb[2].mxu0 %v2009_v7  ;;  %v2978_v7 = vand.u32 4294901760, %v4697_v48 }
 0xa05   : > { %3695 = vmatpush3.msra.mxu0 %v4281_v26  ;;  %3696 = vmatprep.mubr.msk.f32.mxu0 %vm4135_vm0, %v4136_v5 }
 0xa06   : > { %3699 = vmatprep.subr.mxu0 %v4136_v5  ;;  %v3908_v36 = vpack.c.bf16 %v2985_v9, %v2978_v7 }
 0xa0c   : > { %3697 = vmatmul.mubr.f32.vlgmr.msra.gmra.mrb[2].mxu0 %v2010_v10 }
 0xa0d   : > { %3700 = vmatpush3.msra.mxu0 %v2021_v59  ;;  %3701 = vmatprep.mubr.msk.f32.mxu0 %vm4135_vm0, %v4136_v5 }
 0xa0e   : > { %3704 = vmatprep.subr.mxu0 %v4136_v5 }
 0xa12   : > { %4045 = vset.pattern.permute.xlu0 %v4138_v32 }
 0xa13   : > { %1935 = vperm.xlu0 %4045, %v4622_v14  }
 0xa14   : > { %3702 = vmatmul.mubr.f32.vlgmr.msra.gmra.mrb[2].mxu0 %v2008_v6 }
 0xa15   : > { %3705 = vmatpush3.msra.mxu0 %v4281_v26  ;;  %3706 = vmatprep.mubr.msk.f32.mxu0 %vm4135_vm0, %v4136_v5 }
 0xa16   : > { %3892 = vmatprep.subr.bf16.mxu0 %v4134_v2 }
 0xa1c   : > { %3707 = vmatmul.mubr.f32.vlgmr.msra.gmra.mrb[2].mxu0 %v2008_v6  ;;  %v2973_v6 = vand.u32 4294901760, %v2972_v1 }
 0xa1d   : > { %3796 = vmatprep.mubr.msk.f32.mxu0 %vm4135_vm0, %v4136_v5 }
 0xa69   : > { %v1916_v15 = vpop.trf.xlu0 }
 0xa6a   : > { %v2394_v50 = vsel %vm1202_vm3, %v1916_v15, 0  ;;  %v2987_v15 = vand.u32 4294901760, %v2986_v12  ;;  %vm2851_vm3 = vcmask 261120  }
 0xa6b   : > { %v2462_v61 = vand.u32 4294901760, %v2394_v50 }
 0xa6d   : > { %v2463_v17 = vsub.f32 %v2394_v50, %v2462_v61 }
 0xa6f   : > { %v2464_v32 = vand.u32 4294901760, %v2463_v17 }
 0xa71   : > { %v2465_v18 = vsub.f32 %v2463_v17, %v2464_v32 }
 0xa73   : > { %v2466_v19 = vand.u32 4294901760, %v2465_v18 }
 0xa75   : > { %3712 = vmatmul.mubr.f32.vlgmr.msra.gmra.mrb[2].mxu1 %v2466_v19 }
 0xa76   : > { %3715 = vmatpush3.msra.mxu1 %v2023_v11  ;;  %3716 = vmatprep.mubr.msk.f32.mxu1 %vm4135_vm0, %v4136_v5  ;;  %v2979_v11 = vsub.f32 %v4697_v48, %v2978_v7 }
 0xa77   : > { %3719 = vmatprep.subr.mxu1 %v4136_v5 }
 0xa78   : > { %v2980_v13 = vand.u32 4294901760, %v2979_v11 }
 0xa7a   : > { %v3881_v50 = vpack.c.bf16 %v2987_v15, %v2980_v13 }
 0xa7d   : > { %3717 = vmatmul.mubr.f32.vlgmr.msra.gmra.mrb[2].mxu1 %v2462_v61 }
 0xa7e   : > { %3720 = vmatpush3.msra.mxu1 %v2020_v0  ;;  %3721 = vmatprep.mubr.msk.f32.mxu1 %vm4135_vm0, %v4136_v5  ;;  %v2965_v0 = vsub.f32 %v4693_v46, %v2964_v57 }
 0xa7f   : > { %3724 = vmatprep.subr.mxu1 %v4136_v5 }
 0xa85   : > { %3722 = vmatmul.mubr.f32.vlgmr.msra.gmra.mrb[2].mxu1 %v2463_v17  ;;  %v3887_v17 = vpack.c.bf16 %v4695_v47, %v4693_v46 }
 0xa86   : > { %3725 = vmatpush3.msra.mxu1 %v4281_v26  ;;  %3726 = vmatprep.mubr.msk.f32.mxu1 %vm4135_vm0, %v4136_v5 }
 0xa87   : > { %3729 = vmatprep.subr.mxu1 %v4136_v5 }
 0xa8d   : > { %3727 = vmatmul.mubr.f32.vlgmr.msra.gmra.mrb[2].mxu1 %v2464_v32  ;;  %v3890_v32 = vpack.c.bf16 %v4699_v52, %v4697_v48 }
 0xa8e   : > { %3730 = vmatpush3.msra.mxu1 %v2021_v59  ;;  %3731 = vmatprep.mubr.msk.f32.mxu1 %vm4135_vm0, %v4136_v5  ;;  %v2966_v59 = vand.u32 4294901760, %v2965_v0 }
 0xa8f   : > { %3734 = vmatprep.subr.mxu1 %v4136_v5 }
 0xa90   : > { %v3878_v10 = vpack.c.bf16 %v2973_v6, %v2966_v59 }
 0xa92   : > { %v1936_v28 = vpop.permute.xlu0 %1935 }
 0xa93   : > { %v1938_v33 = vmul.f32 %v4069_v31, %v1936_v28 }
 0xa95   : > { %3732 = vmatmul.mubr.f32.vlgmr.msra.gmra.mrb[2].mxu1 %v2462_v61 }
 0xa96   : > { %3735 = vmatpush3.msra.mxu1 %v4281_v26  ;;  %3736 = vmatprep.mubr.msk.f32.mxu1 %vm4135_vm0, %v4136_v5  ;;  %v2854_v26 = vld [vmem:[%s4805_s3 + $0x8] sm:$0xff] }
 0xa97   : > { %3865 = vmatprep.subr.bf16.mxu1 %v4134_v2  ;;  %v2870_v23 = vand.u32 4294901760, %v2854_v26 }
 0xa99   : > { %v4659_v8 = vpack.c.bf16 %v2870_v23, %v2867_v3  ;;  %v4663_v27 = vsub.f32 %v2854_v26, %v2870_v23 }
 0xa9b   : > { %3894 = vmatpush3.bf16.msra.mxu0 %v4659_v8  ;;  %v2957_v54 = vand.u32 4294901760, %v4663_v27 }
 0xa9c   : > { %3895 = vmatprep.subr.bf16.mxu0 %v4134_v2 }
 0xa9d   : > { %3737 = vmatmul.mubr.f32.vlgmr.msra.gmra.mrb[2].mxu1 %v2462_v61  ;;  %v3902_v55 = vpack.c.bf16 %v2957_v54, %v2950_v53  ;;  %v2958_v41 = vsub.f32 %v4663_v27, %v2957_v54  ;;  %v3884_v61 = vpack.c.bf16 %v4663_v27, %v4661_v25 }
 0xa9e   : > { %3751 = vmatprep.mubr.msk.f32.mxu1 %vm4135_vm0, %v4136_v5  ;;  %3867 = vmatpush3.bf16.msra.mxu1 %v4659_v8 }
 0xa9f   : > { %3868 = vmatprep.subr.bf16.mxu1 %v4134_v2  ;;  %3897 = vmatpush3.bf16.msra.mxu0 %v4678_v39  ;;  %v2959_v45 = vand.u32 4294901760, %v2958_v41 }
 0xaa0   : > { %3898 = vmatprep.subr.bf16.mxu0 %v4134_v2 }
 0xaa1   : > { %v3875_v60 = vpack.c.bf16 %v2959_v45, %v2952_v56 }
 0xaa2   : > { %3870 = vmatpush3.bf16.msra.mxu1 %v4678_v39 }
 0xaa3   : > { %3871 = vmatprep.subr.bf16.mxu1 %v4134_v2  ;;  %3900 = vmatpush3.bf16.msra.mxu0 %v4690_v24 }
 0xaa4   : > { %3901 = vmatprep.subr.bf16.mxu0 %v4134_v2 }
 0xaa6   : > { %3873 = vmatpush3.bf16.msra.mxu1 %v4690_v24 }
 0xaa7   : > { %3874 = vmatprep.subr.bf16.mxu1 %v4134_v2 }
 0xaef   : > { %v2384_v20 = vpop.f32.mrb[2].mxu0 }
 0xaf0   : > { %2389 = vrot.lane.b32.xlu1 %v2384_v20, %s4151_s8  ;;  %v3708_v21 = vpop.f32.mrb[3].mxu0 }
 0xb62   : > { %v2390_v35 = vpop.permute.xlu1 %2389 }
 0xb63   : > { %v2392_v37 = vadd.f32 %v2390_v35, %v1938_v33 }
 0xb65   : > { %2843 = vrot.lane.b32.xlu1 %v2392_v37, %s4139_s26  ;;  %s4152_s26 = smov 96  }
 0xb70   : > { %v2838_v51 = vpop.f32.mrb[2].mxu1 }
 0xb71   : > { %v3738_v58 = vpop.f32.mrb[3].mxu1  ;;  %2847 = vrot.lane.b32.xlu1 %v2838_v51, %s4151_s8 }
 0xb75   : > { %3378 = vrot.lane.b32.xlu1 %v4622_v14, %s4152_s26 }
 0xb79   : > { %3381 = vrot.lane.b32.xlu1 %v4603_v4, %s4153_s9 }
 0xb7d   : > { %2859 = vrot.lane.b32.xlu1 %v4069_v31, %s4154_s10 }
 0xbd7   : > { %v2844_v18 = vpop.permute.xlu1 %2843 }
 0xbd8   : > { %v2850_v14 = vsel %vm241_vm1, %v4599_v63, %v2844_v18 }
 0xbe3   : > { %v2848_v19 = vpop.permute.xlu1 %2847 }
 0xbe4   : > { %v2852_v4 = vsel %vm2851_vm3, %v2850_v14, %v2848_v19 }
 0xbe5   : > { %v2864_v20 = vsel %vm2862_vm4, %v2852_v4, 0 }
 0xbe6   : > { %v2937_v21 = vand.u32 4294901760, %v2864_v20 }
 0xbe7   : > { %v3379_v22 = vpop.permute.xlu1 %3378 }
 0xbe8   : > { %v2938_v26 = vsub.f32 %v2864_v20, %v2937_v21 }
 0xbea   : > { %v2939_v3 = vand.u32 4294901760, %v2938_v26 }
 0xbeb   : > { %v3382_v23 = vpop.permute.xlu1 %3381 }
 0xbec   : > { %3797 = vmatmul.mubr.f32.vlgmr.msra.gmra.mrb[4].mxu0 %v2939_v3  ;;  %v3384_v25 = vsel %vm1236_vm5, %v3379_v22, %v3382_v23  ;;  %v2940_v27 = vsub.f32 %v2938_v26, %v2939_v3 }
 0xbed   : > { %3903 = vmatpush3.bf16.msra.mxu0 %v3902_v55  ;;  %3386 = vrot.lane.b32.xlu1 %v3384_v25, %s4151_s8  ;;  %s226_s8 = sand.u32 1, %s4124_s19  }
 0xbee   : > { %3904 = vmatprep.subr.bf16.mxu0 %v4134_v2  ;;  %v2941_v63 = vand.u32 4294901760, %v2940_v27  ;;  %3811 = vmatprep.mubr.msk.f32.mxu0 %vm4135_vm0, %v4136_v5  ;;  %s3482_s11 = sshll.u32 %s226_s8, 3  ;;  %s3394_s22 = scalar_lea.sflag [#allocation3], %s226_s8 }
 0xbef   : > { %v2860_v29 = vpop.permute.xlu1 %2859  ;;  %s228_s13 = scalar_lea.vmem [#allocation2], %s3482_s11 }
 0xbf0   : > { %3752 = vmatmul.mubr.f32.vlgmr.msra.gmra.mrb[4].mxu1 %v2941_v63  ;;  %s3407_s14 = sshll.u32 %s228_s13, 4  ;;  %s4761_s14 = int_to_ptr.vmem [resolvable:$true] %s3407_s14 }
 0xbf1   : > { %3876 = vmatpush3.bf16.msra.mxu1 %v3875_v60  ;;  %3906 = vmatpush3.bf16.msra.mxu0 %v3905_v62  ;;  %s4070_s23 = scalar_lea.vmem %s4761_s14, 128  ;;  %p4077_p0 = scmp.lt.s32.totalorder %s4761_s14, %s4075_s30 }
 0xbf2   : > { %3877 = vmatprep.subr.bf16.mxu1 %v4134_v2  ;;  %3907 = vmatprep.subr.bf16.mxu0 %v4134_v2  ;;  %p4071_p11 = scmp.ne.s32.totalorder %s4761_s14, %s4070_s23  ;;  %p4078_p1 = scmp.lt.s32.totalorder %s4076_s6, %s4070_s23 }
 0xbf3   : > { %3766 = vmatprep.mubr.msk.f32.mxu1 %vm4135_vm0, %v4136_v5 }
 0xbf4   : > { %p4072_p12 = pnand %p4071_p11, %p4224_p5  ;;  %p4079_p2 = por %p4078_p1, %p4077_p0 }
 0xbf5   : > { %3879 = vmatpush3.bf16.msra.mxu1 %v3878_v10  ;;  %3909 = vmatpush3.bf16.msra.mxu0 %v3908_v36 }
 0xbf6   : > { %3880 = vmatprep.subr.bf16.mxu1 %v4134_v2  ;;  %3910 = vmatprep.subr.bf16.mxu0 %v4134_v2  ;;  %p4073_p13 = pneg %p4072_p12 }
 0xbf8   : > { %3812 = vmatmul.mubr.f32.vlgmr.msra.gmra.mrb[4].mxu0 %v2937_v21  ;;  %p4080_p3 = pnand %p4079_p2, %p4073_p13 }
 0xbf9   : > { %3882 = vmatpush3.bf16.msra.mxu1 %v3881_v50  ;;  %3912 = vmatpush3.bf16.msra.mxu0 %v4659_v8 }
 0xbfa   : > { %3883 = vmatprep.subr.bf16.mxu1 %v4134_v2  ;;  %3913 = vmatprep.subr.bf16.mxu0 %v4134_v2 }
 0xbfb   : > { %3826 = vmatprep.mubr.msk.f32.mxu0 %vm4135_vm0, %v4136_v5 }
 0xbfc   : > { %3767 = vmatmul.mubr.f32.vlgmr.msra.gmra.mrb[4].mxu1 %v2937_v21 }
 0xbfd   : > { %3885 = vmatpush3.bf16.msra.mxu1 %v3884_v61  ;;  %3915 = vmatpush3.bf16.msra.mxu0 %v4678_v39 }
 0xbfe   : > { %3886 = vmatprep.subr.bf16.mxu1 %v4134_v2  ;;  %3916 = vmatprep.subr.bf16.mxu0 %v4134_v2 }
 0xbff   : > { %3781 = vmatprep.mubr.msk.f32.mxu1 %vm4135_vm0, %v4136_v5  ;;  %vm3390_vm0 = vcmask 334848  }
 0xc01   : > { %3888 = vmatpush3.bf16.msra.mxu1 %v3887_v17  ;;  %3918 = vmatpush3.bf16.msra.mxu0 %v4690_v24 }
 0xc02   : > { %3889 = vmatprep.subr.bf16.mxu1 %v4134_v2 }
 0xc04   : > { %3827 = vmatmul.mubr.f32.vlgmr.msra.gmra.mrb[4].mxu0 %v2937_v21 }
 0xc05   : > { %3891 = vmatpush3.bf16.msra.mxu1 %v3890_v32 }
 0xc08   : > { %3782 = vmatmul.mubr.f32.vlgmr.msra.gmra.mrb[4].mxu1 %v2938_v26 }
 0xc5f   : > { %v3387_v49 = vpop.permute.xlu1 %3386 }
 0xcd7   : > { %v3373_v8 = vpop.f32.mrb[4].mxu0 }
 0xcd8   : > { %v3828_v28 = vpop.f32.mrb[5].mxu0 }
 0xcdb   : > { %v3128_v30 = vpop.f32.mrb[4].mxu1 }
 0xcdc   : > { %v3919_v31 = vadd.f32 %v3128_v30, %v2860_v29  ;;  %v3783_v33 = vpop.f32.mrb[5].mxu1 }
 0xcde   : > { %v3920_v16 = vadd.f32 %v3919_v31, %v3373_v8 }
 0xce0   : > { %v3377_v5 = vmax.f32 %v3920_v16, 0.0 }
 0xce2   : > { %v3389_v2 = vsel %vm2851_vm3, %v3377_v5, %v3387_v49 }
 0xce3   : > { %v3391_v35 = vsel %vm3390_vm0, %v3389_v2, 0.0 }
 0xce4   : > { %3392 = vst.msk [vmem:[%s228_s13] sm:$0xff] %vm2862_vm4, %v3391_v35 }
 0xce5   : > { %4083 = shalt.err (!%p4080_p3)
}
 0xce6   : > { %s4084_s7 = scalar_lea.hbm %s4759_s17, 128  ;;  %s4088_s10 = scalar_lea.hbm %s4807_s5, 256 }
 0xce7   : > { %p4085_p4 = scmp.ne.s32.totalorder %s4759_s17, %s4084_s7  ;;  %p4089_p9 = scmp.lt.u32.totalorder %s4759_s17, %s4807_s5 }
 0xce8   : > { %p4090_p10 = scmp.lt.u32.totalorder %s4088_s10, %s4084_s7  ;;  %p4092_p12 = scmp.lt.u32.totalorder %s4084_s7, %s4759_s17 }
 0xce9   : > { %p4086_p7 = pnand %p4085_p4, %p4224_p5 }
 0xcea   : > { %p4091_p11 = por %p4090_p10, %p4089_p9 }
 0xceb   : > { %p4087_p8 = pneg %p4086_p7 }
 0xcec   : > { %p4093_p13 = por %p4092_p12, %p4091_p11 }
 0xcee   : > { %p4094_p0 = pnand %p4093_p13, %p4087_p8 }
 0xcf0   : > { %4097 = shalt.err (!%p4094_p0)
}
 0xcf1   : > { %3969 = dma.vmem_to_hbm [thread:$0]  (%p4224_p5), %s4761_s14, 128, %s4759_s17, %s3394_s22  }
 0xcf2 PF: > { %p3975_p1 = scmp.ge.s32.totalorder %s4132_s21, 2  ;;  %s3419_s12 = sand.u32 1, %s4120_s18  }
 0xcf3   : > { %s3420_s13 = scalar_lea.sflag [#allocation3], %s3419_s12 }
 0xcf4   : > { %p3972_p2 = pnand %p3975_p1, %p4228_p6 }
 0xcf6   : > { %4115 = dma.done.wait (!%p3972_p2), %s3420_s13, 128  }
 0xcf7   : > { %4117 = vsyncadd (!%p3972_p2), %s3420_s13, 4294967168  ;;  %p15_p3 = scmp.ge.s32.totalorder %s4211_s24, 4   ;;  %s4810_s18 = smov %s4124_s19 }
 0xcf8   : > { %s4811_s19 = smov %s4128_s20  ;;  %s4812_s20 = smov %s4222_s27 }
 0xcf9   : > { %s4813_s21 = smov %s4211_s24  ;;  %17 = sbr.rel (!%p15_p3) target bundleno = 3 (0x3), region = 78 }
 0xd00   :  { %3425 = vsyncpa [#allocation3], 1 }
 0xd01   :  { %3427 = vsyncpa [#allocation3 + $0x1], 1 }

</bundles_post_ra>
